<compile_context>
chip_gen: v5e
topology: v5e:2x2
jax: 0.10.0
libtpu: 0.0.40
codegen_flags: <defaults>
</compile_context>

<pallas_src>
import jax
import jax.numpy as jnp
from jax import lax
from jax.experimental import pallas as pl
from jax.experimental.pallas import tpu as pltpu

NUM_DET = 5   # SiPix, Crystal, WSi, PbSi, PbScint
N = 64        # nodes per detector graph-batch (kNN over all N, matching batch=None)
F = 16        # input node-feature dim (in_channels=-1 is lazy in torch; fixed here)
B = 2         # graphs per batch (for global_add_pool)
OUT = 64      # GravNetConv out_channels
S_PAD = 8     # space_dimensions=3, zero-padded to 8 lanes
A_PAD = 8     # [mean, max] aggregation placed in lanes 0/1 of an 8-lane slab
K = 16        # k nearest neighbours
NEG = -1e30

# dot_general dimension numbers for "A @ B^T" (contract last dims) — same
# pattern the official Pallas TPU flash-attention kernel uses.
NT_DIMS = (((1,), (1,)), ((), ()))


def gravnet_kernel(x_ref, ws_ref, bs_ref, whr_ref, bh_ref,
                   wo1_ref, wo2_ref, bo_ref, pool_ref, out_ref):
    """GravNetConv + ELU + global_add_pool for one detector type (one grid step)."""
    x = x_ref[...]                                                      # (N, F)

    # Learned-space projection (3 real dims zero-padded to 8 lanes).
    s = jnp.dot(x, ws_ref[...], preferred_element_type=jnp.float32) + bs_ref[...]   # (N, S_PAD)
    # Propagate feature produced directly in row layout (node index on lanes).
    h_row = (lax.dot_general(whr_ref[...], x, NT_DIMS,
                             preferred_element_type=jnp.float32)
             + bh_ref[...])                                             # (1, N)

    # Pairwise squared distances via the Gram identity (single MXU matmul).
    gram = lax.dot_general(s, s, NT_DIMS, preferred_element_type=jnp.float32)  # (N, N)
    rows = lax.broadcasted_iota(jnp.int32, (N, N), 0)
    cols = lax.broadcasted_iota(jnp.int32, (N, N), 1)
    diag = jnp.where(rows == cols, gram, 0.0)
    r_col = jnp.sum(diag, axis=-1, keepdims=True)                       # (N, 1) ||s_i||^2
    r_row = jnp.sum(diag, axis=0, keepdims=True)                        # (1, N) ||s_j||^2
    d2 = jnp.maximum(r_col + r_row - 2.0 * gram, 0.0)                   # (N, N), d2[i,i]==0
    w_edge = jnp.exp(-10.0 * d2)                                        # GravNet edge weights

    # k-NN selection over all N nodes. Packed monotone key: the f32 bit pattern
    # of d2 (non-negative -> order-preserving as int) with the low 6 mantissa
    # bits replaced by the column index => keys are unique per row and ordered
    # by distance, ties broken by column.  One lane-min + one compare per step.
    d2c = jnp.minimum(d2, 1e30)                                         # keep keys finite
    key = pltpu.bitcast(
        jnp.bitwise_or(jnp.bitwise_and(pltpu.bitcast(d2c, jnp.int32), -64), cols),
        jnp.float32)
    sel = jnp.zeros((N, N), dtype=jnp.bool_)
    for _ in range(K):                                # statically unrolled; no matmul inside
        kmin = jnp.min(key, axis=-1, keepdims=True)                     # (N, 1)
        onehot = key == kmin                                            # one hit per row
        sel = jnp.logical_or(sel, onehot)
        key = jnp.where(onehot, jnp.inf, key)

    # Messages m_ij = h_j * w_ij (propagate dim == 1 -> scalar per edge),
    # aggregated over the K selected neighbours in one masked pass.
    msg = w_edge * h_row                                                # (N, N)
    acc_sum = jnp.sum(jnp.where(sel, msg, 0.0), axis=-1, keepdims=True)  # (N, 1)
    acc_max = jnp.max(jnp.where(sel, msg, NEG), axis=-1, keepdims=True)  # (N, 1)

    # [mean | max] placed in lanes 0/1 of an 8-lane slab matching wo2's rows.
    lane8 = lax.broadcasted_iota(jnp.int32, (1, A_PAD), 1)
    agg = (jnp.where(lane8 == 0, acc_sum * (1.0 / K), 0.0)
           + jnp.where(lane8 == 1, acc_max, 0.0))                       # (N, A_PAD)

    # out = lin_out1(x) + lin_out2([mean, max]) + bias, then ELU.
    feat = (jnp.dot(x, wo1_ref[...], preferred_element_type=jnp.float32)
            + jnp.dot(agg, wo2_ref[...], preferred_element_type=jnp.float32)
            + bo_ref[...])                                              # (N, OUT)
    feat = jnp.where(feat > 0.0, feat, jnp.exp(jnp.minimum(feat, 0.0)) - 1.0)  # ELU

    # global_add_pool: per-graph sum as a (B, N) one-hot matmul on the MXU.
    out_ref[...] = jnp.dot(pool_ref[...], feat, preferred_element_type=jnp.float32)


def net_forward(x_all, ws_all, bs_all, whr_all, bh_all,
                wo1_all, wo2_all, bo_all, pool_onehot, w_out, b_out):
    pooled = pl.pallas_call(
        gravnet_kernel,
        out_shape=jax.ShapeDtypeStruct((NUM_DET, B, OUT), jnp.float32),
        grid_spec=pltpu.PrefetchScalarGridSpec(
            num_scalar_prefetch=0,
            grid=(NUM_DET,),
            in_specs=[
                pl.BlockSpec((None, N, F), lambda i: (i, 0, 0)),        # x
                pl.BlockSpec((None, F, S_PAD), lambda i: (i, 0, 0)),    # ws
                pl.BlockSpec((None, 1, S_PAD), lambda i: (i, 0, 0)),    # bs
                pl.BlockSpec((None, 1, F), lambda i: (i, 0, 0)),        # wh (row layout)
                pl.BlockSpec((None, 1, 1), lambda i: (i, 0, 0)),        # bh
                pl.BlockSpec((None, F, OUT), lambda i: (i, 0, 0)),      # wo1
                pl.BlockSpec((None, A_PAD, OUT), lambda i: (i, 0, 0)),  # wo2 (mean/max rows)
                pl.BlockSpec((None, 1, OUT), lambda i: (i, 0, 0)),      # bo2
                pl.BlockSpec((B, N), lambda i: (0, 0)),                 # pool one-hot (shared)
            ],
            out_specs=pl.BlockSpec((None, B, OUT), lambda i: (i, 0, 0)),
        ),
        compiler_params=pltpu.CompilerParams(
            dimension_semantics=("parallel",)),   # detectors independent -> 2 TCs on v7x
    )(x_all, ws_all, bs_all, whr_all, bh_all, wo1_all, wo2_all, bo_all, pool_onehot)

    # (5, B, OUT) -> (B, 5*OUT) matching torch.cat order, then final Linear(320, 1)
    # in plain jnp (a dedicated 1-lane-output pallas_call is pure launch overhead).
    stack_concat = jnp.transpose(pooled, (1, 0, 2)).reshape(B, NUM_DET * OUT)
    return stack_concat @ w_out + b_out


net_forward = jax.jit(net_forward)


def init_gravnet_params(key, f=F):
    ks = jax.random.split(key, 7)

    def u(k, shape, fan_in):
        bound = float(fan_in) ** -0.5
        return jax.random.uniform(k, shape, jnp.float32, -bound, bound)

    ws = jnp.zeros((f, S_PAD), jnp.float32).at[:, :3].set(u(ks[0], (f, 3), f))
    bs = jnp.zeros((1, S_PAD), jnp.float32).at[:, :3].set(u(ks[1], (1, 3), f))
    whr = u(ks[2], (1, f), f)                       # lin_h weight, row layout
    bh = u(ks[3], (1, 1), f)                        # lin_h bias
    wo1 = u(ks[4], (f, OUT), f)                     # lin_out1, bias=False
    wo2 = jnp.zeros((A_PAD, OUT), jnp.float32).at[:2].set(u(ks[5], (2, OUT), 2))  # rows: mean, max
    bo2 = u(ks[6], (1, OUT), 2)                     # lin_out2 bias
    return dict(ws=ws, bs=bs, whr=whr, bh=bh, wo1=wo1, wo2=wo2, bo2=bo2)


if __name__ == "__main__":
    key = jax.random.PRNGKey(0)
    k_data, k_par = jax.random.split(key)

    det_names = ["SiPix", "Crystal", "WSi", "PbSi", "PbScint"]
    dkeys = jax.random.split(k_data, NUM_DET)
    data = {n: jax.random.normal(dk, (N, F), jnp.float32)
            for n, dk in zip(det_names, dkeys)}
    x_all = jnp.stack([data[n] for n in det_names])              # (5, N, F)

    # batch assignment: first half of nodes -> graph 0, second half -> graph 1
    batch = jnp.repeat(jnp.arange(B), N // B)
    pool_onehot = (batch[None, :] == jnp.arange(B)[:, None]).astype(jnp.float32)  # (B, N)

    pkeys = jax.random.split(k_par, 6)
    conv1 = init_gravnet_params(pkeys[0])   # used for SiPix AND Crystal (as in forward)
    conv2 = init_gravnet_params(pkeys[1])   # WSi
    conv3 = init_gravnet_params(pkeys[2])   # PbSi
    conv4 = init_gravnet_params(pkeys[3])   # PbScint
    # self.lin1 is defined in __init__ but never used in forward() -> not instantiated.
    convs = [conv1, conv1, conv2, conv3, conv4]
    stacked = {k: jnp.stack([c[k] for c in convs]) for k in conv1}

    bound = (NUM_DET * OUT) ** -0.5
    w_out = jax.random.uniform(pkeys[4], (NUM_DET * OUT, 1), jnp.float32, -bound, bound)
    b_out = jax.random.uniform(pkeys[5], (1, 1), jnp.float32, -bound, bound)

    output = net_forward(x_all, stacked["ws"], stacked["bs"], stacked["whr"], stacked["bh"],
                         stacked["wo1"], stacked["wo2"], stacked["bo2"], pool_onehot,
                         w_out, b_out)                             # (B, 1)
    jax.block_until_ready(output)
    print("KERNEL_OK")
</pallas_src>

<mosaic_0001>
module attributes {stable_mosaic.version = 11 : i64} {
  func.func @gravnet_kernel(%arg0: i32, %arg1: memref<1x64x16xf32, #tpu.memory_space<vmem>>, %arg2: memref<1x16x8xf32, #tpu.memory_space<vmem>>, %arg3: memref<1x1x8xf32, #tpu.memory_space<vmem>>, %arg4: memref<1x1x16xf32, #tpu.memory_space<vmem>>, %arg5: memref<1x1x1xf32, #tpu.memory_space<vmem>>, %arg6: memref<1x16x64xf32, #tpu.memory_space<vmem>>, %arg7: memref<1x8x64xf32, #tpu.memory_space<vmem>>, %arg8: memref<1x1x64xf32, #tpu.memory_space<vmem>>, %arg9: memref<2x64xf32, #tpu.memory_space<vmem>>, %arg10: memref<1x2x64xf32, #tpu.memory_space<vmem>>) attributes {dimension_semantics = [#tpu.dimension_semantics<parallel>], iteration_bounds = array<i64: 5>, scalar_prefetch = 0 : i64, scratch_operands = 0 : i64, tpu.core_type = #tpu.core_type<tc>, window_params = [{transform_indices = @transform_0, window_bounds = array<i64: 1, 64, 16>}, {transform_indices = @transform_1, window_bounds = array<i64: 1, 16, 8>}, {transform_indices = @transform_2, window_bounds = array<i64: 1, 1, 8>}, {transform_indices = @transform_3, window_bounds = array<i64: 1, 1, 16>}, {transform_indices = @transform_4, window_bounds = array<i64: 1, 1, 1>}, {transform_indices = @transform_5, window_bounds = array<i64: 1, 16, 64>}, {transform_indices = @transform_6, window_bounds = array<i64: 1, 8, 64>}, {transform_indices = @transform_7, window_bounds = array<i64: 1, 1, 64>}, {pipeline_mode = #tpu.pipeline_mode<synchronous>, transform_indices = @transform_8, window_bounds = array<i64: 2, 64>}, {transform_indices = @transform_9, window_bounds = array<i64: 1, 2, 64>}]} {
    %c0 = arith.constant 0 : index
    %c0_0 = arith.constant 0 : index
    %c0_1 = arith.constant 0 : index
    %0 = vector.load %arg1[%c0, %c0_0, %c0_1] : memref<1x64x16xf32, #tpu.memory_space<vmem>>, vector<1x64x16xf32>
    %1 = vector.shape_cast %0 : vector<1x64x16xf32> to vector<64x16xf32>
    %c0_2 = arith.constant 0 : index
    %c0_3 = arith.constant 0 : index
    %c0_4 = arith.constant 0 : index
    %2 = vector.load %arg2[%c0_2, %c0_3, %c0_4] : memref<1x16x8xf32, #tpu.memory_space<vmem>>, vector<1x16x8xf32>
    %3 = vector.shape_cast %2 : vector<1x16x8xf32> to vector<16x8xf32>
    %cst = arith.constant dense<0.000000e+00> : vector<64x8xf32>
    %4 = tpu.matmul %1, %3, %cst {dimension_numbers = #tpu.dot_dimension_numbers<[1], [0], [0], [1], [0, 0, 1, 1], [], []>} : vector<64x16xf32>, vector<16x8xf32>, vector<64x8xf32> -> vector<64x8xf32>
    %c0_5 = arith.constant 0 : index
    %c0_6 = arith.constant 0 : index
    %c0_7 = arith.constant 0 : index
    %5 = vector.load %arg3[%c0_5, %c0_6, %c0_7] : memref<1x1x8xf32, #tpu.memory_space<vmem>>, vector<1x1x8xf32>
    %6 = vector.shape_cast %5 : vector<1x1x8xf32> to vector<1x8xf32>
    %7 = vector.broadcast %6 : vector<1x8xf32> to vector<64x8xf32>
    %8 = arith.addf %4, %7 : vector<64x8xf32>
    %c0_8 = arith.constant 0 : index
    %c0_9 = arith.constant 0 : index
    %c0_10 = arith.constant 0 : index
    %9 = vector.load %arg4[%c0_8, %c0_9, %c0_10] : memref<1x1x16xf32, #tpu.memory_space<vmem>>, vector<1x1x16xf32>
    %10 = vector.shape_cast %9 : vector<1x1x16xf32> to vector<1x16xf32>
    %cst_11 = arith.constant dense<0.000000e+00> : vector<1x64xf32>
    %11 = tpu.matmul %10, %1, %cst_11 {dimension_numbers = #tpu.dot_dimension_numbers<[1], [1], [0], [0], [0, 0, 1, 0], [], []>} : vector<1x16xf32>, vector<64x16xf32>, vector<1x64xf32> -> vector<1x64xf32>
    %c0_12 = arith.constant 0 : index
    %c0_13 = arith.constant 0 : index
    %c0_14 = arith.constant 0 : index
    %12 = vector.load %arg5[%c0_12, %c0_13, %c0_14] : memref<1x1x1xf32, #tpu.memory_space<vmem>>, vector<1x1x1xf32>
    %13 = vector.shape_cast %12 : vector<1x1x1xf32> to vector<1x1xf32>
    %14 = vector.broadcast %13 : vector<1x1xf32> to vector<1x64xf32>
    %15 = arith.addf %11, %14 : vector<1x64xf32>
    %cst_15 = arith.constant dense<0.000000e+00> : vector<64x64xf32>
    %16 = tpu.matmul %8, %8, %cst_15 {dimension_numbers = #tpu.dot_dimension_numbers<[1], [1], [0], [0], [0, 0, 1, 0], [], []>} : vector<64x8xf32>, vector<64x8xf32>, vector<64x64xf32> -> vector<64x64xf32>
    %17 = tpu.iota {dimensions = array<i32: 0>} : vector<64x64xi32>
    %18 = tpu.iota {dimensions = array<i32: 1>} : vector<64x64xi32>
    %19 = arith.cmpi eq, %17, %18 : vector<64x64xi32>
    %cst_16 = arith.constant 0.000000e+00 : f32
    %20 = vector.broadcast %cst_16 : f32 to vector<64x64xf32>
    %21 = arith.select %19, %16, %20 : vector<64x64xi1>, vector<64x64xf32>
    %cst_17 = arith.constant dense<0.000000e+00> : vector<64xf32>
    %22 = vector.multi_reduction <add>, %21, %cst_17 [1] : vector<64x64xf32> to vector<64xf32>
    %23 = vector.shape_cast %22 : vector<64xf32> to vector<64x1xf32>
    %cst_18 = arith.constant dense<0.000000e+00> : vector<64xf32>
    %24 = vector.multi_reduction <add>, %21, %cst_18 [0] : vector<64x64xf32> to vector<64xf32>
    %25 = vector.shape_cast %24 : vector<64xf32> to vector<1x64xf32>
    %26 = vector.broadcast %23 : vector<64x1xf32> to vector<64x64xf32>
    %27 = vector.broadcast %25 : vector<1x64xf32> to vector<64x64xf32>
    %28 = arith.addf %26, %27 : vector<64x64xf32>
    %cst_19 = arith.constant 2.000000e+00 : f32
    %29 = vector.broadcast %cst_19 : f32 to vector<64x64xf32>
    %30 = arith.mulf %29, %16 : vector<64x64xf32>
    %31 = arith.subf %28, %30 : vector<64x64xf32>
    %cst_20 = arith.constant 0.000000e+00 : f32
    %32 = vector.broadcast %cst_20 : f32 to vector<64x64xf32>
    %33 = arith.maximumf %31, %32 : vector<64x64xf32>
    %cst_21 = arith.constant -1.000000e+01 : f32
    %34 = vector.broadcast %cst_21 : f32 to vector<64x64xf32>
    %35 = arith.mulf %34, %33 : vector<64x64xf32>
    %36 = math.exp %35 : vector<64x64xf32>
    %cst_22 = arith.constant 1.000000e+30 : f32
    %37 = vector.broadcast %cst_22 : f32 to vector<64x64xf32>
    %38 = arith.minimumf %33, %37 : vector<64x64xf32>
    %39 = tpu.bitcast %38 : vector<64x64xf32> -> vector<64x64xi32>
    %c-64_i32 = arith.constant -64 : i32
    %40 = vector.broadcast %c-64_i32 : i32 to vector<64x64xi32>
    %41 = arith.andi %39, %40 : vector<64x64xi32>
    %42 = arith.ori %41, %18 : vector<64x64xi32>
    %43 = tpu.bitcast %42 : vector<64x64xi32> -> vector<64x64xf32>
    %false = arith.constant false
    %44 = vector.broadcast %false : i1 to vector<64x64xi1>
    %cst_23 = arith.constant dense<0x7F800000> : vector<64xf32>
    %45 = vector.multi_reduction <minimumf>, %43, %cst_23 [1] : vector<64x64xf32> to vector<64xf32>
    %46 = vector.shape_cast %45 : vector<64xf32> to vector<64x1xf32>
    %47 = vector.broadcast %46 : vector<64x1xf32> to vector<64x64xf32>
    %48 = arith.cmpf oeq, %43, %47 : vector<64x64xf32>
    %49 = arith.ori %44, %48 : vector<64x64xi1>
    %cst_24 = arith.constant 0x7F800000 : f32
    %50 = vector.broadcast %cst_24 : f32 to vector<64x64xf32>
    %51 = arith.select %48, %50, %43 : vector<64x64xi1>, vector<64x64xf32>
    %cst_25 = arith.constant dense<0x7F800000> : vector<64xf32>
    %52 = vector.multi_reduction <minimumf>, %51, %cst_25 [1] : vector<64x64xf32> to vector<64xf32>
    %53 = vector.shape_cast %52 : vector<64xf32> to vector<64x1xf32>
    %54 = vector.broadcast %53 : vector<64x1xf32> to vector<64x64xf32>
    %55 = arith.cmpf oeq, %51, %54 : vector<64x64xf32>
    %56 = arith.ori %49, %55 : vector<64x64xi1>
    %cst_26 = arith.constant 0x7F800000 : f32
    %57 = vector.broadcast %cst_26 : f32 to vector<64x64xf32>
    %58 = arith.select %55, %57, %51 : vector<64x64xi1>, vector<64x64xf32>
    %cst_27 = arith.constant dense<0x7F800000> : vector<64xf32>
    %59 = vector.multi_reduction <minimumf>, %58, %cst_27 [1] : vector<64x64xf32> to vector<64xf32>
    %60 = vector.shape_cast %59 : vector<64xf32> to vector<64x1xf32>
    %61 = vector.broadcast %60 : vector<64x1xf32> to vector<64x64xf32>
    %62 = arith.cmpf oeq, %58, %61 : vector<64x64xf32>
    %63 = arith.ori %56, %62 : vector<64x64xi1>
    %cst_28 = arith.constant 0x7F800000 : f32
    %64 = vector.broadcast %cst_28 : f32 to vector<64x64xf32>
    %65 = arith.select %62, %64, %58 : vector<64x64xi1>, vector<64x64xf32>
    %cst_29 = arith.constant dense<0x7F800000> : vector<64xf32>
    %66 = vector.multi_reduction <minimumf>, %65, %cst_29 [1] : vector<64x64xf32> to vector<64xf32>
    %67 = vector.shape_cast %66 : vector<64xf32> to vector<64x1xf32>
    %68 = vector.broadcast %67 : vector<64x1xf32> to vector<64x64xf32>
    %69 = arith.cmpf oeq, %65, %68 : vector<64x64xf32>
    %70 = arith.ori %63, %69 : vector<64x64xi1>
    %cst_30 = arith.constant 0x7F800000 : f32
    %71 = vector.broadcast %cst_30 : f32 to vector<64x64xf32>
    %72 = arith.select %69, %71, %65 : vector<64x64xi1>, vector<64x64xf32>
    %cst_31 = arith.constant dense<0x7F800000> : vector<64xf32>
    %73 = vector.multi_reduction <minimumf>, %72, %cst_31 [1] : vector<64x64xf32> to vector<64xf32>
    %74 = vector.shape_cast %73 : vector<64xf32> to vector<64x1xf32>
    %75 = vector.broadcast %74 : vector<64x1xf32> to vector<64x64xf32>
    %76 = arith.cmpf oeq, %72, %75 : vector<64x64xf32>
    %77 = arith.ori %70, %76 : vector<64x64xi1>
    %cst_32 = arith.constant 0x7F800000 : f32
    %78 = vector.broadcast %cst_32 : f32 to vector<64x64xf32>
    %79 = arith.select %76, %78, %72 : vector<64x64xi1>, vector<64x64xf32>
    %cst_33 = arith.constant dense<0x7F800000> : vector<64xf32>
    %80 = vector.multi_reduction <minimumf>, %79, %cst_33 [1] : vector<64x64xf32> to vector<64xf32>
    %81 = vector.shape_cast %80 : vector<64xf32> to vector<64x1xf32>
    %82 = vector.broadcast %81 : vector<64x1xf32> to vector<64x64xf32>
    %83 = arith.cmpf oeq, %79, %82 : vector<64x64xf32>
    %84 = arith.ori %77, %83 : vector<64x64xi1>
    %cst_34 = arith.constant 0x7F800000 : f32
    %85 = vector.broadcast %cst_34 : f32 to vector<64x64xf32>
    %86 = arith.select %83, %85, %79 : vector<64x64xi1>, vector<64x64xf32>
    %cst_35 = arith.constant dense<0x7F800000> : vector<64xf32>
    %87 = vector.multi_reduction <minimumf>, %86, %cst_35 [1] : vector<64x64xf32> to vector<64xf32>
    %88 = vector.shape_cast %87 : vector<64xf32> to vector<64x1xf32>
    %89 = vector.broadcast %88 : vector<64x1xf32> to vector<64x64xf32>
    %90 = arith.cmpf oeq, %86, %89 : vector<64x64xf32>
    %91 = arith.ori %84, %90 : vector<64x64xi1>
    %cst_36 = arith.constant 0x7F800000 : f32
    %92 = vector.broadcast %cst_36 : f32 to vector<64x64xf32>
    %93 = arith.select %90, %92, %86 : vector<64x64xi1>, vector<64x64xf32>
    %cst_37 = arith.constant dense<0x7F800000> : vector<64xf32>
    %94 = vector.multi_reduction <minimumf>, %93, %cst_37 [1] : vector<64x64xf32> to vector<64xf32>
    %95 = vector.shape_cast %94 : vector<64xf32> to vector<64x1xf32>
    %96 = vector.broadcast %95 : vector<64x1xf32> to vector<64x64xf32>
    %97 = arith.cmpf oeq, %93, %96 : vector<64x64xf32>
    %98 = arith.ori %91, %97 : vector<64x64xi1>
    %cst_38 = arith.constant 0x7F800000 : f32
    %99 = vector.broadcast %cst_38 : f32 to vector<64x64xf32>
    %100 = arith.select %97, %99, %93 : vector<64x64xi1>, vector<64x64xf32>
    %cst_39 = arith.constant dense<0x7F800000> : vector<64xf32>
    %101 = vector.multi_reduction <minimumf>, %100, %cst_39 [1] : vector<64x64xf32> to vector<64xf32>
    %102 = vector.shape_cast %101 : vector<64xf32> to vector<64x1xf32>
    %103 = vector.broadcast %102 : vector<64x1xf32> to vector<64x64xf32>
    %104 = arith.cmpf oeq, %100, %103 : vector<64x64xf32>
    %105 = arith.ori %98, %104 : vector<64x64xi1>
    %cst_40 = arith.constant 0x7F800000 : f32
    %106 = vector.broadcast %cst_40 : f32 to vector<64x64xf32>
    %107 = arith.select %104, %106, %100 : vector<64x64xi1>, vector<64x64xf32>
    %cst_41 = arith.constant dense<0x7F800000> : vector<64xf32>
    %108 = vector.multi_reduction <minimumf>, %107, %cst_41 [1] : vector<64x64xf32> to vector<64xf32>
    %109 = vector.shape_cast %108 : vector<64xf32> to vector<64x1xf32>
    %110 = vector.broadcast %109 : vector<64x1xf32> to vector<64x64xf32>
    %111 = arith.cmpf oeq, %107, %110 : vector<64x64xf32>
    %112 = arith.ori %105, %111 : vector<64x64xi1>
    %cst_42 = arith.constant 0x7F800000 : f32
    %113 = vector.broadcast %cst_42 : f32 to vector<64x64xf32>
    %114 = arith.select %111, %113, %107 : vector<64x64xi1>, vector<64x64xf32>
    %cst_43 = arith.constant dense<0x7F800000> : vector<64xf32>
    %115 = vector.multi_reduction <minimumf>, %114, %cst_43 [1] : vector<64x64xf32> to vector<64xf32>
    %116 = vector.shape_cast %115 : vector<64xf32> to vector<64x1xf32>
    %117 = vector.broadcast %116 : vector<64x1xf32> to vector<64x64xf32>
    %118 = arith.cmpf oeq, %114, %117 : vector<64x64xf32>
    %119 = arith.ori %112, %118 : vector<64x64xi1>
    %cst_44 = arith.constant 0x7F800000 : f32
    %120 = vector.broadcast %cst_44 : f32 to vector<64x64xf32>
    %121 = arith.select %118, %120, %114 : vector<64x64xi1>, vector<64x64xf32>
    %cst_45 = arith.constant dense<0x7F800000> : vector<64xf32>
    %122 = vector.multi_reduction <minimumf>, %121, %cst_45 [1] : vector<64x64xf32> to vector<64xf32>
    %123 = vector.shape_cast %122 : vector<64xf32> to vector<64x1xf32>
    %124 = vector.broadcast %123 : vector<64x1xf32> to vector<64x64xf32>
    %125 = arith.cmpf oeq, %121, %124 : vector<64x64xf32>
    %126 = arith.ori %119, %125 : vector<64x64xi1>
    %cst_46 = arith.constant 0x7F800000 : f32
    %127 = vector.broadcast %cst_46 : f32 to vector<64x64xf32>
    %128 = arith.select %125, %127, %121 : vector<64x64xi1>, vector<64x64xf32>
    %cst_47 = arith.constant dense<0x7F800000> : vector<64xf32>
    %129 = vector.multi_reduction <minimumf>, %128, %cst_47 [1] : vector<64x64xf32> to vector<64xf32>
    %130 = vector.shape_cast %129 : vector<64xf32> to vector<64x1xf32>
    %131 = vector.broadcast %130 : vector<64x1xf32> to vector<64x64xf32>
    %132 = arith.cmpf oeq, %128, %131 : vector<64x64xf32>
    %133 = arith.ori %126, %132 : vector<64x64xi1>
    %cst_48 = arith.constant 0x7F800000 : f32
    %134 = vector.broadcast %cst_48 : f32 to vector<64x64xf32>
    %135 = arith.select %132, %134, %128 : vector<64x64xi1>, vector<64x64xf32>
    %cst_49 = arith.constant dense<0x7F800000> : vector<64xf32>
    %136 = vector.multi_reduction <minimumf>, %135, %cst_49 [1] : vector<64x64xf32> to vector<64xf32>
    %137 = vector.shape_cast %136 : vector<64xf32> to vector<64x1xf32>
    %138 = vector.broadcast %137 : vector<64x1xf32> to vector<64x64xf32>
    %139 = arith.cmpf oeq, %135, %138 : vector<64x64xf32>
    %140 = arith.ori %133, %139 : vector<64x64xi1>
    %cst_50 = arith.constant 0x7F800000 : f32
    %141 = vector.broadcast %cst_50 : f32 to vector<64x64xf32>
    %142 = arith.select %139, %141, %135 : vector<64x64xi1>, vector<64x64xf32>
    %cst_51 = arith.constant dense<0x7F800000> : vector<64xf32>
    %143 = vector.multi_reduction <minimumf>, %142, %cst_51 [1] : vector<64x64xf32> to vector<64xf32>
    %144 = vector.shape_cast %143 : vector<64xf32> to vector<64x1xf32>
    %145 = vector.broadcast %144 : vector<64x1xf32> to vector<64x64xf32>
    %146 = arith.cmpf oeq, %142, %145 : vector<64x64xf32>
    %147 = arith.ori %140, %146 : vector<64x64xi1>
    %cst_52 = arith.constant 0x7F800000 : f32
    %148 = vector.broadcast %cst_52 : f32 to vector<64x64xf32>
    %149 = arith.select %146, %148, %142 : vector<64x64xi1>, vector<64x64xf32>
    %cst_53 = arith.constant dense<0x7F800000> : vector<64xf32>
    %150 = vector.multi_reduction <minimumf>, %149, %cst_53 [1] : vector<64x64xf32> to vector<64xf32>
    %151 = vector.shape_cast %150 : vector<64xf32> to vector<64x1xf32>
    %152 = vector.broadcast %151 : vector<64x1xf32> to vector<64x64xf32>
    %153 = arith.cmpf oeq, %149, %152 : vector<64x64xf32>
    %154 = arith.ori %147, %153 : vector<64x64xi1>
    %155 = vector.broadcast %15 : vector<1x64xf32> to vector<64x64xf32>
    %156 = arith.mulf %36, %155 : vector<64x64xf32>
    %cst_54 = arith.constant 0.000000e+00 : f32
    %157 = vector.broadcast %cst_54 : f32 to vector<64x64xf32>
    %158 = arith.select %154, %156, %157 : vector<64x64xi1>, vector<64x64xf32>
    %cst_55 = arith.constant dense<0.000000e+00> : vector<64xf32>
    %159 = vector.multi_reduction <add>, %158, %cst_55 [1] : vector<64x64xf32> to vector<64xf32>
    %160 = vector.shape_cast %159 : vector<64xf32> to vector<64x1xf32>
    %cst_56 = arith.constant -1.000000e+30 : f32
    %161 = vector.broadcast %cst_56 : f32 to vector<64x64xf32>
    %162 = arith.select %154, %156, %161 : vector<64x64xi1>, vector<64x64xf32>
    %cst_57 = arith.constant dense<0xFF800000> : vector<64xf32>
    %163 = vector.multi_reduction <maximumf>, %162, %cst_57 [1] : vector<64x64xf32> to vector<64xf32>
    %164 = vector.shape_cast %163 : vector<64xf32> to vector<64x1xf32>
    %165 = tpu.iota {dimensions = array<i32: 1>} : vector<1x8xi32>
    %c0_i32 = arith.constant 0 : i32
    %166 = vector.broadcast %c0_i32 : i32 to vector<1x8xi32>
    %167 = arith.cmpi eq, %165, %166 : vector<1x8xi32>
    %cst_58 = arith.constant 6.250000e-02 : f32
    %168 = vector.broadcast %cst_58 : f32 to vector<64x1xf32>
    %169 = arith.mulf %160, %168 : vector<64x1xf32>
    %cst_59 = arith.constant 0.000000e+00 : f32
    %170 = vector.shape_cast %167 : vector<1x8xi1> to vector<1x8xi1>
    %171 = vector.broadcast %170 : vector<1x8xi1> to vector<64x8xi1>
    %172 = vector.shape_cast %169 : vector<64x1xf32> to vector<64x1xf32>
    %173 = vector.broadcast %172 : vector<64x1xf32> to vector<64x8xf32>
    %174 = vector.broadcast %cst_59 : f32 to vector<64x8xf32>
    %175 = arith.select %171, %173, %174 : vector<64x8xi1>, vector<64x8xf32>
    %c1_i32 = arith.constant 1 : i32
    %176 = vector.broadcast %c1_i32 : i32 to vector<1x8xi32>
    %177 = arith.cmpi eq, %165, %176 : vector<1x8xi32>
    %cst_60 = arith.constant 0.000000e+00 : f32
    %178 = vector.shape_cast %177 : vector<1x8xi1> to vector<1x8xi1>
    %179 = vector.broadcast %178 : vector<1x8xi1> to vector<64x8xi1>
    %180 = vector.shape_cast %164 : vector<64x1xf32> to vector<64x1xf32>
    %181 = vector.broadcast %180 : vector<64x1xf32> to vector<64x8xf32>
    %182 = vector.broadcast %cst_60 : f32 to vector<64x8xf32>
    %183 = arith.select %179, %181, %182 : vector<64x8xi1>, vector<64x8xf32>
    %184 = arith.addf %175, %183 : vector<64x8xf32>
    %c0_61 = arith.constant 0 : index
    %c0_62 = arith.constant 0 : index
    %c0_63 = arith.constant 0 : index
    %185 = vector.load %arg6[%c0_61, %c0_62, %c0_63] : memref<1x16x64xf32, #tpu.memory_space<vmem>>, vector<1x16x64xf32>
    %186 = vector.shape_cast %185 : vector<1x16x64xf32> to vector<16x64xf32>
    %cst_64 = arith.constant dense<0.000000e+00> : vector<64x64xf32>
    %187 = tpu.matmul %1, %186, %cst_64 {dimension_numbers = #tpu.dot_dimension_numbers<[1], [0], [0], [1], [0, 0, 1, 1], [], []>} : vector<64x16xf32>, vector<16x64xf32>, vector<64x64xf32> -> vector<64x64xf32>
    %c0_65 = arith.constant 0 : index
    %c0_66 = arith.constant 0 : index
    %c0_67 = arith.constant 0 : index
    %188 = vector.load %arg7[%c0_65, %c0_66, %c0_67] : memref<1x8x64xf32, #tpu.memory_space<vmem>>, vector<1x8x64xf32>
    %189 = vector.shape_cast %188 : vector<1x8x64xf32> to vector<8x64xf32>
    %cst_68 = arith.constant dense<0.000000e+00> : vector<64x64xf32>
    %190 = tpu.matmul %184, %189, %cst_68 {dimension_numbers = #tpu.dot_dimension_numbers<[1], [0], [0], [1], [0, 0, 1, 1], [], []>} : vector<64x8xf32>, vector<8x64xf32>, vector<64x64xf32> -> vector<64x64xf32>
    %191 = arith.addf %187, %190 : vector<64x64xf32>
    %c0_69 = arith.constant 0 : index
    %c0_70 = arith.constant 0 : index
    %c0_71 = arith.constant 0 : index
    %192 = vector.load %arg8[%c0_69, %c0_70, %c0_71] : memref<1x1x64xf32, #tpu.memory_space<vmem>>, vector<1x1x64xf32>
    %193 = vector.shape_cast %192 : vector<1x1x64xf32> to vector<1x64xf32>
    %194 = vector.broadcast %193 : vector<1x64xf32> to vector<64x64xf32>
    %195 = arith.addf %191, %194 : vector<64x64xf32>
    %cst_72 = arith.constant 0.000000e+00 : f32
    %196 = vector.broadcast %cst_72 : f32 to vector<64x64xf32>
    %197 = arith.cmpf ogt, %195, %196 : vector<64x64xf32>
    %cst_73 = arith.constant 0.000000e+00 : f32
    %198 = vector.broadcast %cst_73 : f32 to vector<64x64xf32>
    %199 = arith.minimumf %195, %198 : vector<64x64xf32>
    %200 = math.exp %199 : vector<64x64xf32>
    %cst_74 = arith.constant 1.000000e+00 : f32
    %201 = vector.broadcast %cst_74 : f32 to vector<64x64xf32>
    %202 = arith.subf %200, %201 : vector<64x64xf32>
    %203 = arith.select %197, %195, %202 : vector<64x64xi1>, vector<64x64xf32>
    %c0_75 = arith.constant 0 : index
    %c0_76 = arith.constant 0 : index
    %204 = vector.load %arg9[%c0_75, %c0_76] : memref<2x64xf32, #tpu.memory_space<vmem>>, vector<2x64xf32>
    %cst_77 = arith.constant dense<0.000000e+00> : vector<2x64xf32>
    %205 = tpu.matmul %204, %203, %cst_77 {dimension_numbers = #tpu.dot_dimension_numbers<[1], [0], [0], [1], [0, 0, 1, 1], [], []>} : vector<2x64xf32>, vector<64x64xf32>, vector<2x64xf32> -> vector<2x64xf32>
    %c0_78 = arith.constant 0 : index
    %c0_79 = arith.constant 0 : index
    %c0_80 = arith.constant 0 : index
    %206 = vector.load %arg10[%c0_78, %c0_79, %c0_80] : memref<1x2x64xf32, #tpu.memory_space<vmem>>, vector<1x2x64xf32>
    %207 = vector.shape_cast %206 : vector<1x2x64xf32> to vector<2x64xf32>
    %208 = vector.shape_cast %205 : vector<2x64xf32> to vector<1x2x64xf32>
    tpu.vector_store %arg10[%c0_78, %c0_79, %c0_80], %208 {strides = array<i32>} : memref<1x2x64xf32, #tpu.memory_space<vmem>>, vector<1x2x64xf32>,
    return
  }
  func.func @transform_0(%arg0: i32) -> (i32, i32, i32) {
    %c0_i32 = arith.constant 0 : i32
    %c0_i32_0 = arith.constant 0 : i32
    %c0_i32_1 = arith.constant 0 : i32
    return %arg0, %c0_i32, %c0_i32_0 : i32, i32, i32
  }
  func.func @transform_1(%arg0: i32) -> (i32, i32, i32) {
    %c0_i32 = arith.constant 0 : i32
    %c0_i32_0 = arith.constant 0 : i32
    %c0_i32_1 = arith.constant 0 : i32
    return %arg0, %c0_i32, %c0_i32_0 : i32, i32, i32
  }
  func.func @transform_2(%arg0: i32) -> (i32, i32, i32) {
    %c0_i32 = arith.constant 0 : i32
    %c0_i32_0 = arith.constant 0 : i32
    %c0_i32_1 = arith.constant 0 : i32
    return %arg0, %c0_i32, %c0_i32_0 : i32, i32, i32
  }
  func.func @transform_3(%arg0: i32) -> (i32, i32, i32) {
    %c0_i32 = arith.constant 0 : i32
    %c0_i32_0 = arith.constant 0 : i32
    %c0_i32_1 = arith.constant 0 : i32
    return %arg0, %c0_i32, %c0_i32_0 : i32, i32, i32
  }
  func.func @transform_4(%arg0: i32) -> (i32, i32, i32) {
    %c0_i32 = arith.constant 0 : i32
    %c0_i32_0 = arith.constant 0 : i32
    %c0_i32_1 = arith.constant 0 : i32
    return %arg0, %c0_i32, %c0_i32_0 : i32, i32, i32
  }
  func.func @transform_5(%arg0: i32) -> (i32, i32, i32) {
    %c0_i32 = arith.constant 0 : i32
    %c0_i32_0 = arith.constant 0 : i32
    %c0_i32_1 = arith.constant 0 : i32
    return %arg0, %c0_i32, %c0_i32_0 : i32, i32, i32
  }
  func.func @transform_6(%arg0: i32) -> (i32, i32, i32) {
    %c0_i32 = arith.constant 0 : i32
    %c0_i32_0 = arith.constant 0 : i32
    %c0_i32_1 = arith.constant 0 : i32
    return %arg0, %c0_i32, %c0_i32_0 : i32, i32, i32
  }
  func.func @transform_7(%arg0: i32) -> (i32, i32, i32) {
    %c0_i32 = arith.constant 0 : i32
    %c0_i32_0 = arith.constant 0 : i32
    %c0_i32_1 = arith.constant 0 : i32
    return %arg0, %c0_i32, %c0_i32_0 : i32, i32, i32
  }
  func.func @transform_8(%arg0: i32) -> (i32, i32) {
    %c0_i32 = arith.constant 0 : i32
    %c0_i32_0 = arith.constant 0 : i32
    %c0_i32_1 = arith.constant 0 : i32
    return %c0_i32, %c0_i32_0 : i32, i32
  }
  func.func @transform_9(%arg0: i32) -> (i32, i32, i32) {
    %c0_i32 = arith.constant 0 : i32
    %c0_i32_0 = arith.constant 0 : i32
    %c0_i32_1 = arith.constant 0 : i32
    return %arg0, %c0_i32, %c0_i32_0 : i32, i32, i32
  }
}

</mosaic_0001>

<bundles_post_ra>
// kernel: net_forward.1
= control target key start
LH: loop header
LB: loop body
LE: loop exit
PB: predicated region body
PF: predicated region fallthrough
CT: control target
= control target key end

     0   :  { %s2153_s30 = smov 0   ;;  %s3418_s0 = inlined_call_operand.vmem [shape: f32[5,64,16], index: 0, kind: input, shape index: {}]   ;;  %s3419_s1 = inlined_call_operand.vmem [shape: f32[5,16,8], index: 1, kind: input, shape index: {}]   ;;  %s3420_s2 = inlined_call_operand.vmem [shape: f32[5,1,8], index: 2, kind: input, shape index: {}]   ;;  %s3421_s3 = inlined_call_operand.vmem [shape: f32[5,1,16], index: 3, kind: input, shape index: {}]   ;;  %s3422_s4 = inlined_call_operand.vmem [shape: f32[5,1,1], index: 4, kind: input, shape index: {}]   ;;  %s3423_s5 = inlined_call_operand.vmem [shape: f32[5,16,64], index: 5, kind: input, shape index: {}]   ;;  %s3424_s6 = inlined_call_operand.vmem [shape: f32[5,8,64], index: 6, kind: input, shape index: {}]   ;;  %s3425_s7 = inlined_call_operand.vmem [shape: f32[5,1,64], index: 7, kind: input, shape index: {}]   ;;  %s3426_s8 = inlined_call_operand.vmem [shape: f32[2,64], index: 8, kind: input, shape index: {}]   ;;  %s3427_s9 = inlined_call_operand.vmem [shape: f32[5,2,64], index: 9, kind: output, shape index: {}]  }
   0x1 LB: > { %s1965_s10 = sadd.s32 4294967295, %s2100_s30   ;;  %p1969_p0 = scmp.ge.s32.totalorder %s2100_s30, 1  ;;  %s2100_s30 = sphi %s2153_s30, %s19_s30  }
   0x2   : > { %p348_p1 = scmp.lt.s32.totalorder %s2100_s30, 6 }
   0x4   : > { %p349_p2 = pnand %p1969_p0, %p348_p1 }
   0x5   : > { %p409_p3 = scmp.lt.s32.totalorder (!%p349_p2), %s1965_s10, 4 }
   0x6   : > { %352 = sbr.rel (%p349_p2) target bundleno = 2957 (0xb8d), region = 56 }
   0xb   : > { %s3670_s10 = smov (!%p409_p3, %s1965_s10), 4  ;;  %vm3429_vm0 = vcmask 130048   ;;  %vm3428_vm1 = vcmask 64512   ;;  %v621_v27 = vlaneseq  ;;  %vm648_vm3 = vcmask 523264  }
   0xc   : > { %s2039_s11 = sshll.u32 %s3670_s10, 4  ;;  %s2038_s12 = sshll.u32 %s3670_s10, 6 }
   0xd   : > { %s418_s15 = scalar_lea.vmem %s3419_s1, %s2039_s11  ;;  %s2173_s18 = scalar_lea.vmem %s3418_s0, %s2038_s12  ;;  %v622_v28 = vshrl.u32 %v621_v27, 7  ;;  %v2219_v29 = vand.u32 127, %v621_v27 }
   0xe   : > { %v453_v0 = vld [vmem:[%s418_s15 + $0x8] sm:$0xff]  ;;  %v452_v1 = vld [vmem:[%s418_s15] sm:$0xff]  ;;  %s421_s21 = scalar_lea.vmem %s3420_s2, %s3670_s10  ;;  %v446_v4 = vld [vmem:[%s2173_s18 + $0x10] sm:$0xff]  ;;  %s424_s24 = scalar_lea.vmem %s3421_s3, %s3670_s10 }
   0xf   : > { %497 = vmatpush.msra.mxu0 %v453_v0  ;;  %v444_v2 = vld [vmem:[%s2173_s18] sm:$0xff]  ;;  %v445_v3 = vld [vmem:[%s2173_s18 + $0x8] sm:$0xff]  ;;  %v451_v5 = vld [vmem:[%s2173_s18 + $0x38] sm:$0xff]  ;;  %vm632_vm2 = vcmp.eq.s32.totalorder %v622_v28, %v2219_v29  ;;  %v623_v33 = vadd.s32 8, %v622_v28  ;;  %v624_v37 = vadd.s32 16, %v622_v28  ;;  %v625_v42 = vadd.s32 24, %v622_v28  ;;  %s427_s27 = scalar_lea.vmem %s3422_s4, %s3670_s10  ;;  %s432_s16 = scalar_lea.vmem %s3423_s5, %s2039_s11 }
  0x10   : > { %v450_v6 = vld [vmem:[%s2173_s18 + $0x30] sm:$0xff]  ;;  %v447_v7 = vld [vmem:[%s2173_s18 + $0x18] sm:$0xff]  ;;  %v449_v8 = vld [vmem:[%s2173_s18 + $0x28] sm:$0xff]  ;;  %v626_v47 = vadd.s32 32, %v622_v28  ;;  %v627_v52 = vadd.s32 40, %v622_v28  ;;  %v628_v57 = vadd.s32 48, %v622_v28  ;;  %s439_s19 = scalar_lea.vmem %s3425_s7, %s3670_s10 }
  0x11   : > { %498 = vmatpush.msra.mxu0 %v452_v1  ;;  %v448_v9 = vld [vmem:[%s2173_s18 + $0x20] sm:$0xff]  ;;  %vm633_vm4 = vcmp.eq.s32.totalorder %v623_v33, %v2219_v29  ;;  %vm634_vm5 = vcmp.eq.s32.totalorder %v624_v37, %v2219_v29  ;;  %vm635_vm6 = vcmp.eq.s32.totalorder %v625_v42, %v2219_v29  ;;  %v629_v61 = vadd.s32 56, %v622_v28  ;;  %s1976_s28 = sshll.u32 %s3670_s10, 3  ;;  %s1977_s23 = sshll.u32 %s3670_s10, 1 }
  0x12   : > { %1978 = vmatmul.msk.f32.vlgmr.msra.gmra.mxu0 %vm3429_vm0, %v444_v2  ;;  %v2052_v10 = vld [vmem:[%s421_s21] ss:$0 sm:$0xff]  ;;  %vm636_vm7 = vcmp.eq.s32.totalorder %v626_v47, %v2219_v29  ;;  %vm637_vm8 = vcmp.eq.s32.totalorder %v627_v52, %v2219_v29  ;;  %vm638_vm9 = vcmp.eq.s32.totalorder %v628_v57, %v2219_v29  ;;  %s436_s13 = scalar_lea.vmem %s3424_s6, %s1976_s28  ;;  %s443_s26 = scalar_lea.vmem %s3427_s9, %s1977_s23 }
  0x13   : > { %1986 = vmatpush.xpose.msk.msrb.mxu0 %vm3429_vm0, %v451_v5  ;;  %vm639_vm10 = vcmp.eq.s32.totalorder %v629_v61, %v2219_v29 }
  0x17   : > { %1987 = vmatpush.xpose.msk.msrb.mxu0 %vm3429_vm0, %v450_v6 }
  0x1a   : > { %1979 = vmatmul.msk.f32.gmra.mxu0 %vm3429_vm0, %v445_v3 }
  0x1b   : > { %1988 = vmatpush.xpose.msk.msrb.mxu0 %vm3429_vm0, %v449_v8 }
  0x1f   : > { %1989 = vmatpush.xpose.msk.msrb.mxu0 %vm3429_vm0, %v448_v9 }
  0x22   : > { %1980 = vmatmul.msk.f32.gmra.mxu0 %vm3429_vm0, %v446_v4 }
  0x23   : > { %1990 = vmatpush.xpose.msk.msrb.mxu0 %vm3429_vm0, %v447_v7 }
  0x27   : > { %1991 = vmatpush.xpose.msk.msrb.mxu0 %vm3429_vm0, %v446_v4 }
  0x2a   : > { %1981 = vmatmul.msk.f32.gmra.mxu0 %vm3429_vm0, %v447_v7 }
  0x2b   : > { %1992 = vmatpush.xpose.msk.msrb.mxu0 %vm3429_vm0, %v445_v3 }
  0x2f   : > { %1993 = vmatpush.xpose.msk.msrb.mxu0 %vm3429_vm0, %v444_v2 }
  0x32   : > { %1982 = vmatmul.msk.f32.gmra.mxu0 %vm3429_vm0, %v448_v9 }
  0x3a   : > { %1983 = vmatmul.msk.f32.gmra.mxu0 %vm3429_vm0, %v449_v8 }
  0x42   : > { %1984 = vmatmul.msk.f32.gmra.mxu0 %vm3429_vm0, %v450_v6 }
  0x4a   : > { %1985 = vmatmul.msk.f32.gmra.mxu0 %vm3429_vm0, %v451_v5 }
  0x8f   : > { %v500_v11 = vpop.f32.mrf.mxu0 }
  0x90   : > { %v501_v12 = vadd.f32 %v2052_v10, %v500_v11 }
  0x97   : > { %v503_v13 = vpop.f32.mrf.mxu0 }
  0x98   : > { %v504_v14 = vadd.f32 %v2052_v10, %v503_v13 }
  0x9f   : > { %v506_v15 = vpop.f32.mrf.mxu0 }
  0xa0   : > { %v507_v26 = vadd.f32 %v2052_v10, %v506_v15 }
  0xa7   : > { %v509_v16 = vpop.f32.mrf.mxu0 }
  0xa8   : > { %v510_v25 = vadd.f32 %v2052_v10, %v509_v16 }
  0xaf   : > { %v512_v17 = vpop.f32.mrf.mxu0 }
  0xb0   : > { %v513_v24 = vadd.f32 %v2052_v10, %v512_v17 }
  0xb7   : > { %v515_v18 = vpop.f32.mrf.mxu0 }
  0xb8   : > { %v516_v23 = vadd.f32 %v2052_v10, %v515_v18 }
  0xbf   : > { %v518_v19 = vpop.f32.mrf.mxu0 }
  0xc0   : > { %v519_v22 = vadd.f32 %v2052_v10, %v518_v19 }
  0xc7   : > { %v521_v20 = vpop.f32.mrf.mxu0 }
  0xc8   : > { %v522_v21 = vadd.f32 %v2052_v10, %v521_v20 }
  0xca   : > { %1995 = vmatpush.xpose.msk.msra.mxu2 %vm3428_vm1, %v522_v21 }
  0xce   : > { %1996 = vmatpush.xpose.msk.msra.mxu2 %vm3428_vm1, %v519_v22 }
  0xd2   : > { %1997 = vmatpush.xpose.msk.msra.mxu2 %vm3428_vm1, %v516_v23 }
  0xd6   : > { %1998 = vmatpush.xpose.msk.msra.mxu2 %vm3428_vm1, %v513_v24 }
  0xda   : > { %1999 = vmatpush.xpose.msk.msra.mxu2 %vm3428_vm1, %v510_v25 }
  0xde   : > { %2000 = vmatpush.xpose.msk.msra.mxu2 %vm3428_vm1, %v507_v26 }
  0xe2   : > { %2001 = vmatpush.xpose.msk.msra.mxu2 %vm3428_vm1, %v504_v14 }
  0xe6   : > { %2002 = vmatpush.xpose.msk.msra.mxu2 %vm3428_vm1, %v501_v12 }
  0xe9   : > { %2003 = vmatmul.msk.f32.vlgmr.msra.gmra.mxu2 %vm3428_vm1, %v501_v12 }
  0xf1   : > { %2004 = vmatmul.msk.f32.gmra.mxu2 %vm3428_vm1, %v504_v14 }
  0xf9   : > { %2005 = vmatmul.msk.f32.gmra.mxu2 %vm3428_vm1, %v507_v26 }
 0x101   : > { %2006 = vmatmul.msk.f32.gmra.mxu2 %vm3428_vm1, %v510_v25 }
 0x109   : > { %2007 = vmatmul.msk.f32.gmra.mxu2 %vm3428_vm1, %v513_v24 }
 0x111   : > { %2008 = vmatmul.msk.f32.gmra.mxu2 %vm3428_vm1, %v516_v23 }
 0x119   : > { %2009 = vmatmul.msk.f32.gmra.mxu2 %vm3428_vm1, %v519_v22 }
 0x121   : > { %2010 = vmatmul.msk.f32.gmra.mxu2 %vm3428_vm1, %v522_v21 }
 0x16c   : > { %v597_v30 = vpop.f32.mrf.mxu2 }
 0x16d   : > { %v640_v31 = vsel %vm632_vm2, %v597_v30, 0.0  ;;  %v694_v11 = vmul.f32 2.0, %v597_v30 }
 0x16e   : > { %v649_v32 = vsel %vm648_vm3, %v640_v31, 0.0 }
 0x16f   : > { %650 = vadd.xlane.f32.xlu0 %v649_v32 }
 0x174   : > { %v600_v34 = vpop.f32.mrf.mxu2 }
 0x175   : > { %v641_v35 = vsel %vm633_vm4, %v600_v34, 0.0  ;;  %v695_v17 = vmul.f32 2.0, %v600_v34 }
 0x176   : > { %v652_v36 = vsel %vm648_vm3, %v641_v35, 0.0 }
 0x177   : > { %653 = vadd.xlane.f32.xlu0 %v652_v36  ;;  %v673_v38 = vadd.f32 %v652_v36, %v649_v32 }
 0x17c   : > { %v603_v39 = vpop.f32.mrf.mxu2 }
 0x17d   : > { %v642_v40 = vsel %vm634_vm5, %v603_v39, 0.0  ;;  %v696_v26 = vmul.f32 2.0, %v603_v39 }
 0x17e   : > { %v655_v41 = vsel %vm648_vm3, %v642_v40, 0.0 }
 0x17f   : > { %656 = vadd.xlane.f32.xlu1 %v655_v41  ;;  %v674_v43 = vadd.f32 %v673_v38, %v655_v41 }
 0x184   : > { %v2228_v44 = vpop.f32.mrf.mxu2 }
 0x185   : > { %v643_v45 = vsel %vm635_vm6, %v2228_v44, 0.0  ;;  %v697_v36 = vmul.f32 2.0, %v2228_v44 }
 0x186   : > { %v658_v46 = vsel %vm648_vm3, %v643_v45, 0.0 }
 0x187   : > { %659 = vadd.xlane.f32.xlu1 %v658_v46  ;;  %v675_v48 = vadd.f32 %v674_v43, %v658_v46 }
 0x18c   : > { %v2233_v49 = vpop.f32.mrf.mxu2 }
 0x18d   : > { %v644_v50 = vsel %vm636_vm7, %v2233_v49, 0.0  ;;  %v698_v46 = vmul.f32 2.0, %v2233_v49 }
 0x18e   : > { %v661_v51 = vsel %vm648_vm3, %v644_v50, 0.0 }
 0x18f   : > { %662 = vadd.xlane.f32.xlu2 %v661_v51  ;;  %v676_v53 = vadd.f32 %v675_v48, %v661_v51 }
 0x194   : > { %v2238_v54 = vpop.f32.mrf.mxu2 }
 0x195   : > { %v645_v55 = vsel %vm637_vm8, %v2238_v54, 0.0 }
 0x196   : > { %v664_v56 = vsel %vm648_vm3, %v645_v55, 0.0 }
 0x197   : > { %665 = vadd.xlane.f32.xlu2 %v664_v56  ;;  %v677_v1 = vadd.f32 %v676_v53, %v664_v56  ;;  %v699_v56 = vmul.f32 2.0, %v2238_v54 }
 0x19c   : > { %v2243_v58 = vpop.f32.mrf.mxu2 }
 0x19d   : > { %v646_v59 = vsel %vm638_vm9, %v2243_v58, 0.0 }
 0x19e   : > { %v667_v60 = vsel %vm648_vm3, %v646_v59, 0.0 }
 0x19f   : > { %668 = vadd.xlane.f32.xlu0 %v667_v60  ;;  %v678_v2 = vadd.f32 %v677_v1, %v667_v60 }
 0x1a4   : > { %v2248_v62 = vpop.f32.mrf.mxu2 }
 0x1a5   : > { %v647_v63 = vsel %vm639_vm10, %v2248_v62, 0.0 }
 0x1a6   : > { %v670_v0 = vsel %vm648_vm3, %v647_v63, 0.0 }
 0x1a7   : > { %671 = vadd.xlane.f32.xlu2 %v670_v0  ;;  %v679_v3 = vadd.f32 %v678_v2, %v670_v0  ;;  %v700_v2 = vmul.f32 2.0, %v2243_v58 }
 0x1a9   : > { %v680_v4 = vrot.slane %v679_v3, 4 }
 0x1ab   : > { %v681_v5 = vadd.f32 %v680_v4, %v679_v3 }
 0x1ad   : > { %v682_v6 = vrot.slane %v681_v5, 2 }
 0x1af   : > { %v683_v7 = vadd.f32 %v682_v6, %v681_v5 }
 0x1b1   : > { %v684_v8 = vrot.slane %v683_v7, 1 }
 0x1b3   : > { %v2252_v9 = vadd.f32 %v684_v8, %v683_v7 }
 0x1e2   : > { %v651_v10 = vpop.xlane.xlu0 %650 }
 0x1e3   : > { %v686_v12 = vadd.f32 %v2252_v9, %v651_v10 }
 0x1e5   : > { %v702_v13 = vsub.f32 %v686_v12, %v694_v11  ;;  %v701_v11 = vmul.f32 2.0, %v2248_v62 }
 0x1e7   : > { %v2255_v14 = vmax.f32 %v702_v13, 0.0 }
 0x1e9   : > { %v742_v15 = vmin.f32 %v2255_v14, 1e+30 }
 0x1ea   : > { %v654_v16 = vpop.xlane.xlu0 %653 }
 0x1eb   : > { %v758_v18 = vand.u32 4294967232, %v742_v15  ;;  %v687_v19 = vadd.f32 %v2252_v9, %v654_v16 }
 0x1ed   : > { %v703_v20 = vsub.f32 %v687_v19, %v695_v17  ;;  %v2260_v21 = vor.u32 %v758_v18, %v2219_v29 }
 0x1ef   : > { %v2262_v22 = vmax.f32 %v703_v20, 0.0  ;;  %v782_v23 = vsel %vm648_vm3, %v2260_v21, inf }
 0x1f0   : > { %783 = vmin.xlane.f32.xlu1 %v782_v23 }
 0x1f1   : > { %v743_v24 = vmin.f32 %v2262_v22, 1e+30 }
 0x1f2   : > { %v657_v25 = vpop.xlane.xlu1 %656 }
 0x1f3   : > { %v759_v27 = vand.u32 4294967232, %v743_v24  ;;  %v688_v28 = vadd.f32 %v2252_v9, %v657_v25 }
 0x1f5   : > { %v704_v30 = vsub.f32 %v688_v28, %v696_v26  ;;  %v2269_v31 = vor.u32 %v759_v27, %v2219_v29 }
 0x1f7   : > { %v2271_v32 = vmax.f32 %v704_v30, 0.0  ;;  %v785_v33 = vsel %vm648_vm3, %v2269_v31, inf }
 0x1f8   : > { %786 = vmin.xlane.f32.xlu0 %v785_v33 }
 0x1f9   : > { %v744_v34 = vmin.f32 %v2271_v32, 1e+30 }
 0x1fa   : > { %v660_v35 = vpop.xlane.xlu1 %659 }
 0x1fb   : > { %v760_v37 = vand.u32 4294967232, %v744_v34  ;;  %v689_v38 = vadd.f32 %v2252_v9, %v660_v35 }
 0x1fd   : > { %v705_v39 = vsub.f32 %v689_v38, %v697_v36  ;;  %v2279_v40 = vor.u32 %v760_v37, %v2219_v29 }
 0x1ff   : > { %v2281_v41 = vmax.f32 %v705_v39, 0.0  ;;  %v788_v42 = vsel %vm648_vm3, %v2279_v40, inf }
 0x200   : > { %789 = vmin.xlane.f32.xlu1 %v788_v42 }
 0x201   : > { %v745_v43 = vmin.f32 %v2281_v41, 1e+30 }
 0x202   : > { %v663_v45 = vpop.xlane.xlu2 %662 }
 0x203   : > { %v761_v47 = vand.u32 4294967232, %v745_v43  ;;  %v690_v44 = vadd.f32 %v2252_v9, %v663_v45 }
 0x205   : > { %v706_v48 = vsub.f32 %v690_v44, %v698_v46  ;;  %v2289_v50 = vor.u32 %v761_v47, %v2219_v29 }
 0x207   : > { %v2291_v51 = vmax.f32 %v706_v48, 0.0  ;;  %v791_v52 = vsel %vm648_vm3, %v2289_v50, inf }
 0x208   : > { %792 = vmin.xlane.f32.xlu2 %v791_v52 }
 0x209   : > { %v746_v53 = vmin.f32 %v2291_v51, 1e+30 }
 0x20a   : > { %v666_v55 = vpop.xlane.xlu2 %665 }
 0x20b   : > { %v762_v57 = vand.u32 4294967232, %v746_v53  ;;  %v691_v49 = vadd.f32 %v2252_v9, %v666_v55 }
 0x20d   : > { %v707_v59 = vsub.f32 %v691_v49, %v699_v56  ;;  %v2299_v60 = vor.u32 %v762_v57, %v2219_v29 }
 0x20f   : > { %v2301_v61 = vmax.f32 %v707_v59, 0.0  ;;  %v794_v63 = vsel %vm648_vm3, %v2299_v60, inf }
 0x210   : > { %795 = vmin.xlane.f32.xlu0 %v794_v63 }
 0x211   : > { %v747_v0 = vmin.f32 %v2301_v61, 1e+30 }
 0x212   : > { %v669_v1 = vpop.xlane.xlu0 %668 }
 0x213   : > { %v763_v3 = vand.u32 4294967232, %v747_v0  ;;  %v692_v54 = vadd.f32 %v2252_v9, %v669_v1 }
 0x215   : > { %v708_v4 = vsub.f32 %v692_v54, %v700_v2  ;;  %v2309_v5 = vor.u32 %v763_v3, %v2219_v29 }
 0x217   : > { %v2311_v6 = vmax.f32 %v708_v4, 0.0  ;;  %v797_v7 = vsel %vm648_vm3, %v2309_v5, inf }
 0x218   : > { %798 = vmin.xlane.f32.xlu1 %v797_v7 }
 0x219   : > { %v748_v8 = vmin.f32 %v2311_v6, 1e+30 }
 0x21a   : > { %v672_v10 = vpop.xlane.xlu2 %671 }
 0x21b   : > { %v764_v12 = vand.u32 4294967232, %v748_v8  ;;  %v693_v58 = vadd.f32 %v2252_v9, %v672_v10 }
 0x21d   : > { %v709_v13 = vsub.f32 %v693_v58, %v701_v11  ;;  %v2319_v15 = vor.u32 %v764_v12, %v2219_v29 }
 0x21f   : > { %v800_v16 = vsel %vm648_vm3, %v2319_v15, inf  ;;  %v2323_v17 = vmax.f32 %v709_v13, 0.0 }
 0x220   : > { %801 = vmin.xlane.f32.xlu0 %v800_v16 }
 0x221   : > { %v749_v18 = vmin.f32 %v2323_v17, 1e+30 }
 0x223   : > { %v765_v9 = vand.u32 4294967232, %v749_v18 }
 0x225   : > { %v2339_v23 = vor.u32 %v765_v9, %v2219_v29 }
 0x227   : > { %v803_v27 = vsel %vm648_vm3, %v2339_v23, inf }
 0x263   : > { %v2326_v19 = vpop.xlane.xlu1 %783 }
 0x264   : > { %vm806_vm11 = vcmp.eq.f32.partialorder %v2260_v21, %v2326_v19 }
 0x265   : > { %v2334_v62 = vsel %vm806_vm11, inf, %v2260_v21 }
 0x266   : > { %v822_v20 = vsel %vm648_vm3, %v2334_v62, inf }
 0x267   : > { %823 = vmin.xlane.f32.xlu2 %v822_v20 }
 0x26b   : > { %v2341_v24 = vpop.xlane.xlu0 %786 }
 0x26c   : > { %vm807_vm12 = vcmp.eq.f32.partialorder %v2269_v31, %v2341_v24 }
 0x26d   : > { %v2349_v25 = vsel %vm807_vm12, inf, %v2269_v31 }
 0x26e   : > { %v825_v26 = vsel %vm648_vm3, %v2349_v25, inf }
 0x26f   : > { %826 = vmin.xlane.f32.xlu1 %v825_v26  ;;  %804 = vmin.xlane.f32.xlu2 %v803_v27 }
 0x273   : > { %v2355_v28 = vpop.xlane.xlu1 %789 }
 0x274   : > { %vm808_vm13 = vcmp.eq.f32.partialorder %v2279_v40, %v2355_v28 }
 0x275   : > { %v2363_v30 = vsel %vm808_vm13, inf, %v2279_v40 }
 0x276   : > { %v828_v33 = vsel %vm648_vm3, %v2363_v30, inf }
 0x277   : > { %829 = vmin.xlane.f32.xlu0 %v828_v33 }
 0x27b   : > { %v2367_v34 = vpop.xlane.xlu2 %792 }
 0x27c   : > { %vm809_vm14 = vcmp.eq.f32.partialorder %v2289_v50, %v2367_v34 }
 0x27d   : > { %v2375_v35 = vsel %vm809_vm14, inf, %v2289_v50 }
 0x27e   : > { %v831_v36 = vsel %vm648_vm3, %v2375_v35, inf }
 0x27f   : > { %832 = vmin.xlane.f32.xlu1 %v831_v36 }
 0x283   : > { %v2379_v37 = vpop.xlane.xlu0 %795 }
 0x284   : > { %vm810_vm15 = vcmp.eq.f32.partialorder %v2299_v60, %v2379_v37 }
 0x285   : > { %v2387_v38 = vsel %vm810_vm15, inf, %v2299_v60 }
 0x286   : > { %v834_v39 = vsel %vm648_vm3, %v2387_v38, inf }
 0x287   : > { %835 = vmin.xlane.f32.xlu2 %v834_v39 }
 0x28b   : > { %v2391_v42 = vpop.xlane.xlu1 %798 }
 0x28c   : > { %vm3432_vm2 = vcmp.eq.f32.partialorder %v2309_v5, %v2391_v42 }
 0x28d   : > { %v2399_v43 = vsel %vm3432_vm2, inf, %v2309_v5 }
 0x28e   : > { %v837_v45 = vsel %vm648_vm3, %v2399_v43, inf }
 0x28f   : > { %838 = vmin.xlane.f32.xlu0 %v837_v45 }
 0x293   : > { %v2403_v46 = vpop.xlane.xlu0 %801 }
 0x294   : > { %vm3431_vm4 = vcmp.eq.f32.partialorder %v2319_v15, %v2403_v46 }
 0x295   : > { %v2411_v47 = vsel %vm3431_vm4, inf, %v2319_v15 }
 0x296   : > { %v840_v44 = vsel %vm648_vm3, %v2411_v47, inf }
 0x297   : > { %841 = vmin.xlane.f32.xlu2 %v840_v44 }
 0x2da   : > { %v824_v48 = vpop.xlane.xlu2 %823 }
 0x2db   : > { %vm846_vm5 = vcmp.eq.f32.partialorder %v2334_v62, %v824_v48 }
 0x2dc   : > { %v862_v52 = vsel %vm846_vm5, inf, %v2334_v62 }
 0x2dd   : > { %v870_v53 = vsel %vm648_vm3, %v862_v52, inf }
 0x2de   : > { %871 = vmin.xlane.f32.xlu1 %v870_v53 }
 0x2e2   : > { %v2420_v55 = vpop.xlane.xlu2 %804  ;;  %v827_v56 = vpop.xlane.xlu1 %826 }
 0x2e3   : > { %vm3430_vm6 = vcmp.eq.f32.partialorder %v2339_v23, %v2420_v55  ;;  %vm847_vm7 = vcmp.eq.f32.partialorder %v2349_v25, %v827_v56 }
 0x2e4   : > { %v2429_v57 = vsel %vm3430_vm6, inf, %v2339_v23  ;;  %v863_v49 = vsel %vm847_vm7, inf, %v2349_v25  ;;  %vm854_vm6 = vmor %vm806_vm11, %vm846_vm5 }
 0x2e5   : > { %v843_v59 = vsel %vm648_vm3, %v2429_v57, inf  ;;  %v873_v63 = vsel %vm648_vm3, %v863_v49, inf }
 0x2e6   : > { %844 = vmin.xlane.f32.xlu1 %v843_v59  ;;  %874 = vmin.xlane.f32.xlu0 %v873_v63 }
 0x2ea   : > { %v830_v0 = vpop.xlane.xlu0 %829 }
 0x2eb   : > { %vm848_vm8 = vcmp.eq.f32.partialorder %v2363_v30, %v830_v0 }
 0x2ec   : > { %v864_v1 = vsel %vm848_vm8, inf, %v2363_v30 }
 0x2ed   : > { %v876_v2 = vsel %vm648_vm3, %v864_v1, inf }
 0x2ee   : > { %877 = vmin.xlane.f32.xlu2 %v876_v2 }
 0x2f2   : > { %v833_v3 = vpop.xlane.xlu1 %832 }
 0x2f3   : > { %vm849_vm9 = vcmp.eq.f32.partialorder %v2375_v35, %v833_v3 }
 0x2f4   : > { %v865_v54 = vsel %vm849_vm9, inf, %v2375_v35 }
 0x2f5   : > { %v879_v4 = vsel %vm648_vm3, %v865_v54, inf }
 0x2f6   : > { %880 = vmin.xlane.f32.xlu0 %v879_v4 }
 0x2fa   : > { %v836_v7 = vpop.xlane.xlu2 %835 }
 0x2fb   : > { %vm850_vm10 = vcmp.eq.f32.partialorder %v2387_v38, %v836_v7 }
 0x2fc   : > { %v866_v8 = vsel %vm850_vm10, inf, %v2387_v38 }
 0x2fd   : > { %v882_v10 = vsel %vm648_vm3, %v866_v8, inf }
 0x2fe   : > { %883 = vmin.xlane.f32.xlu1 %v882_v10 }
 0x302   : > { %v839_v11 = vpop.xlane.xlu0 %838 }
 0x303   : > { %vm3434_vm1 = vcmp.eq.f32.partialorder %v2399_v43, %v839_v11 }
 0x304   : > { %v867_v12 = vsel %vm3434_vm1, inf, %v2399_v43 }
 0x305   : > { %v885_v58 = vsel %vm648_vm3, %v867_v12, inf }
 0x306   : > { %886 = vmin.xlane.f32.xlu2 %v885_v58 }
 0x30a   : > { %v842_v13 = vpop.xlane.xlu2 %841 }
 0x30b   : > { %vm3433_vm0 = vcmp.eq.f32.partialorder %v2411_v47, %v842_v13 }
 0x30c   : > { %v868_v16 = vsel %vm3433_vm0, inf, %v2411_v47  ;;  %vm855_vm0 = vmor %vm807_vm12, %vm847_vm7 }
 0x30d   : > { %v888_v18 = vsel %vm648_vm3, %v868_v16, inf }
 0x30e   : > { %889 = vmin.xlane.f32.xlu1 %v888_v18 }
 0x351   : > { %v872_v9 = vpop.xlane.xlu1 %871 }
 0x352   : > { %vm894_vm4 = vcmp.eq.f32.partialorder %v862_v52, %v872_v9 }
 0x353   : > { %vm2467_vm2 = vmor %vm854_vm6, %vm894_vm4  ;;  %v910_v26 = vsel %vm894_vm4, inf, %v862_v52 }
 0x354   : > { %v918_v27 = vsel %vm648_vm3, %v910_v26, inf }
 0x355   : > { %919 = vmin.xlane.f32.xlu0 %v918_v27 }
 0x359   : > { %v875_v33 = vpop.xlane.xlu0 %874  ;;  %v845_v36 = vpop.xlane.xlu1 %844 }
 0x35a   : > { %vm895_vm1 = vcmp.eq.f32.partialorder %v863_v49, %v875_v33  ;;  %vm3435_vm11 = vcmp.eq.f32.partialorder %v2429_v57, %v845_v36 }
 0x35b   : > { %vm2478_vm5 = vmor %vm855_vm0, %vm895_vm1  ;;  %v911_v19 = vsel %vm895_vm1, inf, %v863_v49  ;;  %v869_v62 = vsel %vm3435_vm11, inf, %v2429_v57 }
 0x35c   : > { %v921_v39 = vsel %vm648_vm3, %v911_v19, inf  ;;  %v891_v25 = vsel %vm648_vm3, %v869_v62, inf  ;;  %vm856_vm0 = vmor %vm808_vm13, %vm848_vm8 }
 0x35d   : > { %922 = vmin.xlane.f32.xlu2 %v921_v39  ;;  %892 = vmin.xlane.f32.xlu0 %v891_v25  ;;  %vm857_vm1 = vmor %vm809_vm14, %vm849_vm9  ;;  %vm3446_vm14 = vcmp.eq.f32.partialorder %v2399_v43, %v839_v11  ;;  %vm3447_vm9 = vcmp.eq.f32.partialorder %v2309_v5, %v2391_v42 }
 0x35e   : > { %vm858_vm13 = vmor %vm810_vm15, %vm850_vm10  ;;  %vm3450_vm15 = vcmp.eq.f32.partialorder %v2411_v47, %v842_v13  ;;  %vm3451_vm10 = vcmp.eq.f32.partialorder %v2319_v15, %v2403_v46 }
 0x361   : > { %v878_v31 = vpop.xlane.xlu2 %877 }
 0x362   : > { %vm896_vm12 = vcmp.eq.f32.partialorder %v864_v1, %v878_v31 }
 0x363   : > { %vm2492_vm4 = vmor %vm856_vm0, %vm896_vm12  ;;  %v912_v45 = vsel %vm896_vm12, inf, %v864_v1 }
 0x364   : > { %v924_v44 = vsel %vm648_vm3, %v912_v45, inf  ;;  %vm859_vm12 = vmor %vm3447_vm9, %vm3446_vm14 }
 0x365   : > { %925 = vmin.xlane.f32.xlu1 %v924_v44 }
 0x369   : > { %v881_v48 = vpop.xlane.xlu0 %880 }
 0x36a   : > { %vm897_vm6 = vcmp.eq.f32.partialorder %v865_v54, %v881_v48 }
 0x36b   : > { %vm2502_vm7 = vmor %vm857_vm1, %vm897_vm6  ;;  %v913_v28 = vsel %vm897_vm6, inf, %v865_v54 }
 0x36c   : > { %v927_v30 = vsel %vm648_vm3, %v913_v28, inf }
 0x36d   : > { %928 = vmin.xlane.f32.xlu2 %v927_v30 }
 0x371   : > { %v884_v52 = vpop.xlane.xlu1 %883 }
 0x372   : > { %vm898_vm8 = vcmp.eq.f32.partialorder %v866_v8, %v884_v52 }
 0x373   : > { %vm2512_vm0 = vmor %vm858_vm13, %vm898_vm8  ;;  %v914_v34 = vsel %vm898_vm8, inf, %v866_v8 }
 0x374   : > { %v930_v35 = vsel %vm648_vm3, %v914_v34, inf  ;;  %vm860_vm13 = vmor %vm3451_vm10, %vm3450_vm15 }
 0x375   : > { %931 = vmin.xlane.f32.xlu0 %v930_v35 }
 0x379   : > { %v887_v53 = vpop.xlane.xlu2 %886 }
 0x37a   : > { %vm899_vm1 = vcmp.eq.f32.partialorder %v867_v12, %v887_v53 }
 0x37b   : > { %vm2522_vm6 = vmor %vm859_vm12, %vm899_vm1  ;;  %v915_v37 = vsel %vm899_vm1, inf, %v867_v12  ;;  %vm3456_vm12 = vcmp.eq.f32.partialorder %v2429_v57, %v845_v36  ;;  %vm3457_vm1 = vcmp.eq.f32.partialorder %v2339_v23, %v2420_v55 }
 0x37c   : > { %v933_v38 = vsel %vm648_vm3, %v915_v37, inf  ;;  %vm861_vm15 = vmor %vm3457_vm1, %vm3456_vm12 }
 0x37d   : > { %934 = vmin.xlane.f32.xlu1 %v933_v38 }
 0x381   : > { %v890_v56 = vpop.xlane.xlu1 %889 }
 0x382   : > { %vm900_vm8 = vcmp.eq.f32.partialorder %v868_v16, %v890_v56 }
 0x383   : > { %vm2532_vm11 = vmor %vm860_vm13, %vm900_vm8  ;;  %v916_v42 = vsel %vm900_vm8, inf, %v868_v16 }
 0x384   : > { %v936_v43 = vsel %vm648_vm3, %v916_v42, inf }
 0x385   : > { %937 = vmin.xlane.f32.xlu0 %v936_v43 }
 0x3c8   : > { %v920_v49 = vpop.xlane.xlu0 %919 }
 0x3c9   : > { %vm942_vm14 = vcmp.eq.f32.partialorder %v910_v26, %v920_v49 }
 0x3ca   : > { %vm2539_vm9 = vmor %vm2467_vm2, %vm942_vm14  ;;  %v958_v47 = vsel %vm942_vm14, inf, %v910_v26 }
 0x3cb   : > { %v966_v15 = vsel %vm648_vm3, %v958_v47, inf }
 0x3cc   : > { %967 = vmin.xlane.f32.xlu2 %v966_v15 }
 0x3d0   : > { %v923_v46 = vpop.xlane.xlu2 %922  ;;  %v893_v63 = vpop.xlane.xlu0 %892 }
 0x3d1   : > { %vm943_vm10 = vcmp.eq.f32.partialorder %v911_v19, %v923_v46  ;;  %vm901_vm13 = vcmp.eq.f32.partialorder %v869_v62, %v893_v63 }
 0x3d2   : > { %vm2551_vm2 = vmor %vm2478_vm5, %vm943_vm10  ;;  %v959_v1 = vsel %vm943_vm10, inf, %v911_v19  ;;  %v917_v2 = vsel %vm901_vm13, inf, %v869_v62 }
 0x3d3   : > { %vm2555_vm8 = vmor %vm861_vm15, %vm901_vm13  ;;  %v969_v57 = vsel %vm648_vm3, %v959_v1, inf  ;;  %v939_v54 = vsel %vm648_vm3, %v917_v2, inf }
 0x3d4   : > { %970 = vmin.xlane.f32.xlu1 %v969_v57  ;;  %940 = vmin.xlane.f32.xlu2 %v939_v54 }
 0x3d8   : > { %v926_v23 = vpop.xlane.xlu1 %925 }
 0x3d9   : > { %vm944_vm14 = vcmp.eq.f32.partialorder %v912_v45, %v926_v23 }
 0x3da   : > { %vm2563_vm5 = vmor %vm2492_vm4, %vm944_vm14  ;;  %v960_v4 = vsel %vm944_vm14, inf, %v912_v45 }
 0x3db   : > { %v972_v7 = vsel %vm648_vm3, %v960_v4, inf }
 0x3dc   : > { %973 = vmin.xlane.f32.xlu0 %v972_v7 }
 0x3e0   : > { %v929_v8 = vpop.xlane.xlu2 %928 }
 0x3e1   : > { %vm945_vm12 = vcmp.eq.f32.partialorder %v913_v28, %v929_v8 }
 0x3e2   : > { %vm2570_vm1 = vmor %vm2502_vm7, %vm945_vm12  ;;  %v961_v11 = vsel %vm945_vm12, inf, %v913_v28 }
 0x3e3   : > { %v975_v12 = vsel %vm648_vm3, %v961_v11, inf }
 0x3e4   : > { %976 = vmin.xlane.f32.xlu1 %v975_v12 }
 0x3e8   : > { %v932_v58 = vpop.xlane.xlu0 %931 }
 0x3e9   : > { %vm946_vm4 = vcmp.eq.f32.partialorder %v914_v34, %v932_v58 }
 0x3ea   : > { %vm2577_vm15 = vmor %vm2512_vm0, %vm946_vm4  ;;  %v962_v16 = vsel %vm946_vm4, inf, %v914_v34 }
 0x3eb   : > { %v978_v18 = vsel %vm648_vm3, %v962_v16, inf }
 0x3ec   : > { %979 = vmin.xlane.f32.xlu2 %v978_v18 }
 0x3f0   : > { %v935_v9 = vpop.xlane.xlu1 %934 }
 0x3f1   : > { %vm947_vm7 = vcmp.eq.f32.partialorder %v915_v37, %v935_v9 }
 0x3f2   : > { %vm2584_vm10 = vmor %vm2522_vm6, %vm947_vm7  ;;  %v963_v26 = vsel %vm947_vm7, inf, %v915_v37 }
 0x3f3   : > { %v981_v27 = vsel %vm648_vm3, %v963_v26, inf }
 0x3f4   : > { %982 = vmin.xlane.f32.xlu0 %v981_v27 }
 0x3f8   : > { %v938_v33 = vpop.xlane.xlu0 %937 }
 0x3f9   : > { %vm948_vm0 = vcmp.eq.f32.partialorder %v916_v42, %v938_v33 }
 0x3fa   : > { %vm2591_vm13 = vmor %vm2532_vm11, %vm948_vm0  ;;  %v964_v21 = vsel %vm948_vm0, inf, %v916_v42 }
 0x3fb   : > { %v984_v19 = vsel %vm648_vm3, %v964_v21, inf }
 0x3fc   : > { %985 = vmin.xlane.f32.xlu2 %v984_v19 }
 0x43f   : > { %v968_v62 = vpop.xlane.xlu2 %967 }
 0x440   : > { %vm990_vm6 = vcmp.eq.f32.partialorder %v958_v47, %v968_v62 }
 0x441   : > { %vm2598_vm14 = vmor %vm2539_vm9, %vm990_vm6  ;;  %v1006_v25 = vsel %vm990_vm6, inf, %v958_v47 }
 0x442   : > { %v1014_v31 = vsel %vm648_vm3, %v1006_v25, inf }
 0x443   : > { %1015 = vmin.xlane.f32.xlu1 %v1014_v31 }
 0x447   : > { %v941_v24 = vpop.xlane.xlu2 %940  ;;  %v971_v45 = vpop.xlane.xlu1 %970 }
 0x448   : > { %vm949_vm11 = vcmp.eq.f32.partialorder %v917_v2, %v941_v24  ;;  %vm991_vm12 = vcmp.eq.f32.partialorder %v959_v1, %v971_v45 }
 0x449   : > { %vm2605_vm4 = vmor %vm2555_vm8, %vm949_vm11  ;;  %v965_v48 = vsel %vm949_vm11, inf, %v917_v2  ;;  %v1007_v40 = vsel %vm991_vm12, inf, %v959_v1 }
 0x44a   : > { %vm2611_vm9 = vmor %vm2551_vm2, %vm991_vm12  ;;  %v987_v30 = vsel %vm648_vm3, %v965_v48, inf  ;;  %v1017_v52 = vsel %vm648_vm3, %v1007_v40, inf }
 0x44b   : > { %988 = vmin.xlane.f32.xlu1 %v987_v30  ;;  %1018 = vmin.xlane.f32.xlu0 %v1017_v52 }
 0x44f   : > { %v974_v50 = vpop.xlane.xlu0 %973 }
 0x450   : > { %vm992_vm7 = vcmp.eq.f32.partialorder %v960_v4, %v974_v50 }
 0x451   : > { %vm2619_vm8 = vmor %vm2563_vm5, %vm992_vm7  ;;  %v1008_v35 = vsel %vm992_vm7, inf, %v960_v4 }
 0x452   : > { %v1020_v53 = vsel %vm648_vm3, %v1008_v35, inf }
 0x453   : > { %1021 = vmin.xlane.f32.xlu2 %v1020_v53 }
 0x457   : > { %v977_v60 = vpop.xlane.xlu1 %976 }
 0x458   : > { %vm993_vm2 = vcmp.eq.f32.partialorder %v961_v11, %v977_v60 }
 0x459   : > { %vm2626_vm0 = vmor %vm2570_vm1, %vm993_vm2  ;;  %v1009_v38 = vsel %vm993_vm2, inf, %v961_v11 }
 0x45a   : > { %v1023_v56 = vsel %vm648_vm3, %v1009_v38, inf }
 0x45b   : > { %1024 = vmin.xlane.f32.xlu0 %v1023_v56 }
 0x45f   : > { %v980_v5 = vpop.xlane.xlu2 %979 }
 0x460   : > { %vm994_vm5 = vcmp.eq.f32.partialorder %v962_v16, %v980_v5 }
 0x461   : > { %vm2633_vm6 = vmor %vm2577_vm15, %vm994_vm5  ;;  %v1010_v43 = vsel %vm994_vm5, inf, %v962_v16 }
 0x462   : > { %v1026_v49 = vsel %vm648_vm3, %v1010_v43, inf }
 0x463   : > { %1027 = vmin.xlane.f32.xlu1 %v1026_v49 }
 0x467   : > { %v983_v59 = vpop.xlane.xlu0 %982 }
 0x468   : > { %vm995_vm1 = vcmp.eq.f32.partialorder %v963_v26, %v983_v59 }
 0x469   : > { %vm2640_vm11 = vmor %vm2584_vm10, %vm995_vm1  ;;  %v1011_v15 = vsel %vm995_vm1, inf, %v963_v26 }
 0x46a   : > { %v1029_v46 = vsel %vm648_vm3, %v1011_v15, inf }
 0x46b   : > { %1030 = vmin.xlane.f32.xlu2 %v1029_v46 }
 0x46f   : > { %v986_v63 = vpop.xlane.xlu2 %985 }
 0x470   : > { %vm996_vm15 = vcmp.eq.f32.partialorder %v964_v21, %v986_v63 }
 0x471   : > { %vm2647_vm12 = vmor %vm2591_vm13, %vm996_vm15  ;;  %v1012_v1 = vsel %vm996_vm15, inf, %v964_v21 }
 0x472   : > { %v1032_v2 = vsel %vm648_vm3, %v1012_v1, inf }
 0x473   : > { %1033 = vmin.xlane.f32.xlu1 %v1032_v2 }
 0x4b6   : > { %v1016_v3 = vpop.xlane.xlu1 %1015 }
 0x4b7   : > { %vm1038_vm10 = vcmp.eq.f32.partialorder %v1006_v25, %v1016_v3 }
 0x4b8   : > { %vm2654_vm7 = vmor %vm2598_vm14, %vm1038_vm10  ;;  %v1054_v54 = vsel %vm1038_vm10, inf, %v1006_v25 }
 0x4b9   : > { %v1062_v23 = vsel %vm648_vm3, %v1054_v54, inf }
 0x4ba   : > { %1063 = vmin.xlane.f32.xlu0 %v1062_v23 }
 0x4be   : > { %v1019_v55 = vpop.xlane.xlu0 %1018  ;;  %v989_v4 = vpop.xlane.xlu1 %988 }
 0x4bf   : > { %vm1039_vm13 = vcmp.eq.f32.partialorder %v1007_v40, %v1019_v55  ;;  %vm997_vm2 = vcmp.eq.f32.partialorder %v965_v48, %v989_v4 }
 0x4c0   : > { %vm2661_vm5 = vmor %vm2611_vm9, %vm1039_vm13  ;;  %v1055_v8 = vsel %vm1039_vm13, inf, %v1007_v40  ;;  %v1013_v10 = vsel %vm997_vm2, inf, %v965_v48 }
 0x4c1   : > { %vm2667_vm14 = vmor %vm2605_vm4, %vm997_vm2  ;;  %v1065_v12 = vsel %vm648_vm3, %v1055_v8, inf  ;;  %v1035_v58 = vsel %vm648_vm3, %v1013_v10, inf }
 0x4c2   : > { %1066 = vmin.xlane.f32.xlu2 %v1065_v12  ;;  %1036 = vmin.xlane.f32.xlu0 %v1035_v58 }
 0x4c6   : > { %v1022_v13 = vpop.xlane.xlu2 %1021 }
 0x4c7   : > { %vm1040_vm1 = vcmp.eq.f32.partialorder %v1008_v35, %v1022_v13 }
 0x4c8   : > { %vm2675_vm9 = vmor %vm2619_vm8, %vm1040_vm1  ;;  %v1056_v18 = vsel %vm1040_vm1, inf, %v1008_v35 }
 0x4c9   : > { %v1068_v9 = vsel %vm648_vm3, %v1056_v18, inf }
 0x4ca   : > { %1069 = vmin.xlane.f32.xlu1 %v1068_v9 }
 0x4ce   : > { %v1025_v20 = vpop.xlane.xlu0 %1024 }
 0x4cf   : > { %vm1041_vm4 = vcmp.eq.f32.partialorder %v1009_v38, %v1025_v20 }
 0x4d0   : > { %vm2682_vm15 = vmor %vm2626_vm0, %vm1041_vm4  ;;  %v1057_v27 = vsel %vm1041_vm4, inf, %v1009_v38 }
 0x4d1   : > { %v1071_v33 = vsel %vm648_vm3, %v1057_v27, inf }
 0x4d2   : > { %1072 = vmin.xlane.f32.xlu2 %v1071_v33 }
 0x4d6   : > { %v1028_v36 = vpop.xlane.xlu1 %1027 }
 0x4d7   : > { %vm1042_vm8 = vcmp.eq.f32.partialorder %v1010_v43, %v1028_v36 }
 0x4d8   : > { %vm2689_vm10 = vmor %vm2633_vm6, %vm1042_vm8  ;;  %v1058_v19 = vsel %vm1042_vm8, inf, %v1010_v43 }
 0x4d9   : > { %v1074_v62 = vsel %vm648_vm3, %v1058_v19, inf }
 0x4da   : > { %1075 = vmin.xlane.f32.xlu0 %v1074_v62 }
 0x4de   : > { %v1031_v39 = vpop.xlane.xlu2 %1030 }
 0x4df   : > { %vm1043_vm0 = vcmp.eq.f32.partialorder %v1011_v15, %v1031_v39 }
 0x4e0   : > { %vm2696_vm13 = vmor %vm2640_vm11, %vm1043_vm0  ;;  %v1059_v31 = vsel %vm1043_vm0, inf, %v1011_v15 }
 0x4e1   : > { %v1077_v24 = vsel %vm648_vm3, %v1059_v31, inf }
 0x4e2   : > { %1078 = vmin.xlane.f32.xlu1 %v1077_v24 }
 0x4e6   : > { %v1034_v45 = vpop.xlane.xlu1 %1033 }
 0x4e7   : > { %vm1044_vm6 = vcmp.eq.f32.partialorder %v1012_v1, %v1034_v45 }
 0x4e8   : > { %vm2703_vm2 = vmor %vm2647_vm12, %vm1044_vm6  ;;  %v1060_v48 = vsel %vm1044_vm6, inf, %v1012_v1 }
 0x4e9   : > { %v1080_v40 = vsel %vm648_vm3, %v1060_v48, inf }
 0x4ea   : > { %1081 = vmin.xlane.f32.xlu0 %v1080_v40 }
 0x52d   : > { %v1064_v28 = vpop.xlane.xlu0 %1063 }
 0x52e   : > { %vm1086_vm11 = vcmp.eq.f32.partialorder %v1054_v54, %v1064_v28 }
 0x52f   : > { %vm2710_vm1 = vmor %vm2654_vm7, %vm1086_vm11  ;;  %v1102_v52 = vsel %vm1086_vm11, inf, %v1054_v54 }
 0x530   : > { %v1110_v50 = vsel %vm648_vm3, %v1102_v52, inf }
 0x531   : > { %1111 = vmin.xlane.f32.xlu2 %v1110_v50 }
 0x535   : > { %v1067_v34 = vpop.xlane.xlu2 %1066  ;;  %v1037_v35 = vpop.xlane.xlu0 %1036 }
 0x536   : > { %vm1087_vm12 = vcmp.eq.f32.partialorder %v1055_v8, %v1067_v34  ;;  %vm1045_vm4 = vcmp.eq.f32.partialorder %v1013_v10, %v1037_v35 }
 0x537   : > { %vm2717_vm8 = vmor %vm2661_vm5, %vm1087_vm12  ;;  %v1103_v60 = vsel %vm1087_vm12, inf, %v1055_v8  ;;  %v1061_v37 = vsel %vm1045_vm4, inf, %v1013_v10 }
 0x538   : > { %vm2723_vm7 = vmor %vm2667_vm14, %vm1045_vm4  ;;  %v1113_v56 = vsel %vm648_vm3, %v1103_v60, inf  ;;  %v1083_v5 = vsel %vm648_vm3, %v1061_v37, inf }
 0x539   : > { %1114 = vmin.xlane.f32.xlu1 %v1113_v56  ;;  %1084 = vmin.xlane.f32.xlu2 %v1083_v5 }
 0x53d   : > { %v1070_v42 = vpop.xlane.xlu1 %1069 }
 0x53e   : > { %vm1088_vm0 = vcmp.eq.f32.partialorder %v1056_v18, %v1070_v42 }
 0x53f   : > { %vm2731_vm5 = vmor %vm2675_vm9, %vm1088_vm0  ;;  %v1104_v49 = vsel %vm1088_vm0, inf, %v1056_v18 }
 0x540   : > { %v1116_v59 = vsel %vm648_vm3, %v1104_v49, inf }
 0x541   : > { %1117 = vmin.xlane.f32.xlu0 %v1116_v59 }
 0x545   : > { %v1073_v47 = vpop.xlane.xlu2 %1072 }
 0x546   : > { %vm1089_vm14 = vcmp.eq.f32.partialorder %v1057_v27, %v1073_v47 }
 0x547   : > { %vm2738_vm6 = vmor %vm2682_vm15, %vm1089_vm14  ;;  %v1105_v46 = vsel %vm1089_vm14, inf, %v1057_v27 }
 0x548   : > { %v1119_v63 = vsel %vm648_vm3, %v1105_v46, inf }
 0x549   : > { %1120 = vmin.xlane.f32.xlu1 %v1119_v63 }
 0x54d   : > { %v1076_v0 = vpop.xlane.xlu0 %1075 }
 0x54e   : > { %vm1090_vm9 = vcmp.eq.f32.partialorder %v1058_v19, %v1076_v0 }
 0x54f   : > { %vm2745_vm11 = vmor %vm2689_vm10, %vm1090_vm9  ;;  %v1106_v2 = vsel %vm1090_vm9, inf, %v1058_v19 }
 0x550   : > { %v1122_v3 = vsel %vm648_vm3, %v1106_v2, inf }
 0x551   : > { %1123 = vmin.xlane.f32.xlu2 %v1122_v3 }
 0x555   : > { %v1079_v57 = vpop.xlane.xlu1 %1078 }
 0x556   : > { %vm1091_vm15 = vcmp.eq.f32.partialorder %v1059_v31, %v1079_v57 }
 0x557   : > { %vm2752_vm12 = vmor %vm2696_vm13, %vm1091_vm15  ;;  %v1107_v23 = vsel %vm1091_vm15, inf, %v1059_v31 }
 0x558   : > { %v1125_v55 = vsel %vm648_vm3, %v1107_v23, inf }
 0x559   : > { %1126 = vmin.xlane.f32.xlu0 %v1125_v55 }
 0x55d   : > { %v1082_v4 = vpop.xlane.xlu0 %1081 }
 0x55e   : > { %vm1092_vm10 = vcmp.eq.f32.partialorder %v1060_v48, %v1082_v4 }
 0x55f   : > { %vm2759_vm4 = vmor %vm2703_vm2, %vm1092_vm10  ;;  %v1108_v8 = vsel %vm1092_vm10, inf, %v1060_v48 }
 0x560   : > { %v1128_v10 = vsel %vm648_vm3, %v1108_v8, inf }
 0x561   : > { %1129 = vmin.xlane.f32.xlu2 %v1128_v10 }
 0x5a4   : > { %v1112_v11 = vpop.xlane.xlu2 %1111 }
 0x5a5   : > { %vm1134_vm13 = vcmp.eq.f32.partialorder %v1102_v52, %v1112_v11 }
 0x5a6   : > { %vm2766_vm0 = vmor %vm2710_vm1, %vm1134_vm13  ;;  %v1150_v58 = vsel %vm1134_vm13, inf, %v1102_v52 }
 0x5a7   : > { %v1158_v13 = vsel %vm648_vm3, %v1150_v58, inf }
 0x5a8   : > { %1159 = vmin.xlane.f32.xlu1 %v1158_v13 }
 0x5ac   : > { %v1085_v16 = vpop.xlane.xlu2 %1084  ;;  %v1115_v18 = vpop.xlane.xlu1 %1114 }
 0x5ad   : > { %vm1093_vm2 = vcmp.eq.f32.partialorder %v1061_v37, %v1085_v16  ;;  %vm1135_vm14 = vcmp.eq.f32.partialorder %v1103_v60, %v1115_v18 }
 0x5ae   : > { %vm2773_vm9 = vmor %vm2723_vm7, %vm1093_vm2  ;;  %v1109_v20 = vsel %vm1093_vm2, inf, %v1061_v37  ;;  %v1151_v26 = vsel %vm1135_vm14, inf, %v1103_v60 }
 0x5af   : > { %vm2779_vm1 = vmor %vm2717_vm8, %vm1135_vm14  ;;  %v1131_v33 = vsel %vm648_vm3, %v1109_v20, inf  ;;  %v1161_v36 = vsel %vm648_vm3, %v1151_v26, inf }
 0x5b0   : > { %1132 = vmin.xlane.f32.xlu1 %v1131_v33  ;;  %1162 = vmin.xlane.f32.xlu0 %v1161_v36 }
 0x5b4   : > { %v1118_v21 = vpop.xlane.xlu0 %1117 }
 0x5b5   : > { %vm1136_vm15 = vcmp.eq.f32.partialorder %v1104_v49, %v1118_v21 }
 0x5b6   : > { %vm2787_vm7 = vmor %vm2731_vm5, %vm1136_vm15  ;;  %v1152_v62 = vsel %vm1136_vm15, inf, %v1104_v49 }
 0x5b7   : > { %v1164_v39 = vsel %vm648_vm3, %v1152_v62, inf }
 0x5b8   : > { %1165 = vmin.xlane.f32.xlu2 %v1164_v39 }
 0x5bc   : > { %v1121_v25 = vpop.xlane.xlu1 %1120 }
 0x5bd   : > { %vm1137_vm8 = vcmp.eq.f32.partialorder %v1105_v46, %v1121_v25 }
 0x5be   : > { %vm2794_vm10 = vmor %vm2738_vm6, %vm1137_vm8  ;;  %v1153_v24 = vsel %vm1137_vm8, inf, %v1105_v46 }
 0x5bf   : > { %v1167_v45 = vsel %vm648_vm3, %v1153_v24, inf }
 0x5c0   : > { %1168 = vmin.xlane.f32.xlu0 %v1167_v45 }
 0x5c4   : > { %v1124_v44 = vpop.xlane.xlu2 %1123 }
 0x5c5   : > { %vm1138_vm5 = vcmp.eq.f32.partialorder %v1106_v2, %v1124_v44 }
 0x5c6   : > { %vm2801_vm13 = vmor %vm2745_vm11, %vm1138_vm5  ;;  %v1154_v40 = vsel %vm1138_vm5, inf, %v1106_v2 }
 0x5c7   : > { %v1170_v28 = vsel %vm648_vm3, %v1154_v40, inf }
 0x5c8   : > { %1171 = vmin.xlane.f32.xlu1 %v1170_v28 }
 0x5cc   : > { %v1127_v30 = vpop.xlane.xlu0 %1126 }
 0x5cd   : > { %vm1139_vm6 = vcmp.eq.f32.partialorder %v1107_v23, %v1127_v30 }
 0x5ce   : > { %vm2808_vm2 = vmor %vm2752_vm12, %vm1139_vm6  ;;  %v1155_v50 = vsel %vm1139_vm6, inf, %v1107_v23 }
 0x5cf   : > { %v1173_v34 = vsel %vm648_vm3, %v1155_v50, inf }
 0x5d0   : > { %1174 = vmin.xlane.f32.xlu2 %v1173_v34 }
 0x5d4   : > { %v1130_v35 = vpop.xlane.xlu2 %1129 }
 0x5d5   : > { %vm1140_vm11 = vcmp.eq.f32.partialorder %v1108_v8, %v1130_v35 }
 0x5d6   : > { %vm2815_vm14 = vmor %vm2759_vm4, %vm1140_vm11  ;;  %v1156_v60 = vsel %vm1140_vm11, inf, %v1108_v8 }
 0x5d7   : > { %v1176_v37 = vsel %vm648_vm3, %v1156_v60, inf }
 0x5d8   : > { %1177 = vmin.xlane.f32.xlu1 %v1176_v37 }
 0x61b   : > { %v1160_v38 = vpop.xlane.xlu1 %1159 }
 0x61c   : > { %vm1182_vm12 = vcmp.eq.f32.partialorder %v1150_v58, %v1160_v38 }
 0x61d   : > { %vm2822_vm15 = vmor %vm2766_vm0, %vm1182_vm12  ;;  %v1198_v5 = vsel %vm1182_vm12, inf, %v1150_v58 }
 0x61e   : > { %v1206_v42 = vsel %vm648_vm3, %v1198_v5, inf }
 0x61f   : > { %1207 = vmin.xlane.f32.xlu0 %v1206_v42 }
 0x623   : > { %v1163_v43 = vpop.xlane.xlu0 %1162  ;;  %v1133_v49 = vpop.xlane.xlu1 %1132 }
 0x624   : > { %vm1183_vm4 = vcmp.eq.f32.partialorder %v1151_v26, %v1163_v43  ;;  %vm1141_vm8 = vcmp.eq.f32.partialorder %v1109_v20, %v1133_v49 }
 0x625   : > { %vm2829_vm5 = vmor %vm2779_vm1, %vm1183_vm4  ;;  %v1199_v47 = vsel %vm1183_vm4, inf, %v1151_v26  ;;  %v1157_v15 = vsel %vm1141_vm8, inf, %v1109_v20 }
 0x626   : > { %vm2835_vm0 = vmor %vm2773_vm9, %vm1141_vm8  ;;  %v1209_v63 = vsel %vm648_vm3, %v1199_v47, inf  ;;  %v1179_v0 = vsel %vm648_vm3, %v1157_v15, inf }
 0x627   : > { %1210 = vmin.xlane.f32.xlu2 %v1209_v63  ;;  %1180 = vmin.xlane.f32.xlu0 %v1179_v0 }
 0x62b   : > { %v1166_v1 = vpop.xlane.xlu2 %1165 }
 0x62c   : > { %vm1184_vm6 = vcmp.eq.f32.partialorder %v1152_v62, %v1166_v1 }
 0x62d   : > { %vm2843_vm1 = vmor %vm2787_vm7, %vm1184_vm6  ;;  %v1200_v3 = vsel %vm1184_vm6, inf, %v1152_v62 }
 0x62e   : > { %v1212_v57 = vsel %vm648_vm3, %v1200_v3, inf }
 0x62f   : > { %1213 = vmin.xlane.f32.xlu1 %v1212_v57 }
 0x633   : > { %v1169_v54 = vpop.xlane.xlu0 %1168 }
 0x634   : > { %vm1185_vm9 = vcmp.eq.f32.partialorder %v1153_v24, %v1169_v54 }
 0x635   : > { %vm2850_vm11 = vmor %vm2794_vm10, %vm1185_vm9  ;;  %v1201_v55 = vsel %vm1185_vm9, inf, %v1153_v24 }
 0x636   : > { %v1215_v4 = vsel %vm648_vm3, %v1201_v55, inf }
 0x637   : > { %1216 = vmin.xlane.f32.xlu2 %v1215_v4 }
 0x63b   : > { %v1172_v7 = vpop.xlane.xlu1 %1171 }
 0x63c   : > { %vm1186_vm7 = vcmp.eq.f32.partialorder %v1154_v40, %v1172_v7 }
 0x63d   : > { %vm2857_vm12 = vmor %vm2801_vm13, %vm1186_vm7  ;;  %v1202_v10 = vsel %vm1186_vm7, inf, %v1154_v40 }
 0x63e   : > { %v1218_v11 = vsel %vm648_vm3, %v1202_v10, inf }
 0x63f   : > { %1219 = vmin.xlane.f32.xlu0 %v1218_v11 }
 0x643   : > { %v1175_v12 = vpop.xlane.xlu2 %1174 }
 0x644   : > { %vm1187_vm10 = vcmp.eq.f32.partialorder %v1155_v50, %v1175_v12 }
 0x645   : > { %vm2864_vm4 = vmor %vm2808_vm2, %vm1187_vm10  ;;  %v1203_v13 = vsel %vm1187_vm10, inf, %v1155_v50 }
 0x646   : > { %v1221_v16 = vsel %vm648_vm3, %v1203_v13, inf }
 0x647   : > { %1222 = vmin.xlane.f32.xlu1 %v1221_v16 }
 0x64b   : > { %v1178_v18 = vpop.xlane.xlu1 %1177 }
 0x64c   : > { %vm1188_vm13 = vcmp.eq.f32.partialorder %v1156_v60, %v1178_v18 }
 0x64d   : > { %vm2871_vm8 = vmor %vm2815_vm14, %vm1188_vm13  ;;  %v1204_v20 = vsel %vm1188_vm13, inf, %v1156_v60 }
 0x64e   : > { %v1224_v26 = vsel %vm648_vm3, %v1204_v20, inf }
 0x64f   : > { %1225 = vmin.xlane.f32.xlu0 %v1224_v26 }
 0x692   : > { %v1208_v27 = vpop.xlane.xlu0 %1207 }
 0x693   : > { %vm1230_vm2 = vcmp.eq.f32.partialorder %v1198_v5, %v1208_v27 }
 0x694   : > { %vm2878_vm6 = vmor %vm2822_vm15, %vm1230_vm2  ;;  %v1246_v36 = vsel %vm1230_vm2, inf, %v1198_v5 }
 0x695   : > { %v1254_v21 = vsel %vm648_vm3, %v1246_v36, inf }
 0x696   : > { %1255 = vmin.xlane.f32.xlu2 %v1254_v21 }
 0x69a   : > { %v1211_v19 = vpop.xlane.xlu2 %1210  ;;  %v1181_v62 = vpop.xlane.xlu0 %1180 }
 0x69b   : > { %vm1231_vm14 = vcmp.eq.f32.partialorder %v1199_v47, %v1211_v19  ;;  %vm1189_vm9 = vcmp.eq.f32.partialorder %v1157_v15, %v1181_v62 }
 0x69c   : > { %vm2885_vm7 = vmor %vm2829_vm5, %vm1231_vm14  ;;  %v1247_v25 = vsel %vm1231_vm14, inf, %v1199_v47  ;;  %v1205_v31 = vsel %vm1189_vm9, inf, %v1157_v15 }
 0x69d   : > { %vm2891_vm15 = vmor %vm2835_vm0, %vm1189_vm9  ;;  %v1257_v45 = vsel %vm648_vm3, %v1247_v25, inf  ;;  %v1227_v44 = vsel %vm648_vm3, %v1205_v31, inf }
 0x69e   : > { %1258 = vmin.xlane.f32.xlu1 %v1257_v45  ;;  %1228 = vmin.xlane.f32.xlu2 %v1227_v44 }
 0x6a2   : > { %v1214_v48 = vpop.xlane.xlu1 %1213 }
 0x6a3   : > { %vm1232_vm10 = vcmp.eq.f32.partialorder %v1200_v3, %v1214_v48 }
 0x6a4   : > { %vm2899_vm5 = vmor %vm2843_vm1, %vm1232_vm10  ;;  %v1248_v28 = vsel %vm1232_vm10, inf, %v1200_v3 }
 0x6a5   : > { %v1260_v30 = vsel %vm648_vm3, %v1248_v28, inf }
 0x6a6   : > { %1261 = vmin.xlane.f32.xlu0 %v1260_v30 }
 0x6aa   : > { %v1217_v52 = vpop.xlane.xlu2 %1216 }
 0x6ab   : > { %vm1233_vm0 = vcmp.eq.f32.partialorder %v1201_v55, %v1217_v52 }
 0x6ac   : > { %vm2906_vm13 = vmor %vm2850_vm11, %vm1233_vm0  ;;  %v1249_v34 = vsel %vm1233_vm0, inf, %v1201_v55 }
 0x6ad   : > { %v1263_v35 = vsel %vm648_vm3, %v1249_v34, inf }
 0x6ae   : > { %1264 = vmin.xlane.f32.xlu1 %v1263_v35 }
 0x6b2   : > { %v1220_v53 = vpop.xlane.xlu0 %1219 }
 0x6b3   : > { %vm1234_vm1 = vcmp.eq.f32.partialorder %v1202_v10, %v1220_v53 }
 0x6b4   : > { %vm2913_vm2 = vmor %vm2857_vm12, %vm1234_vm1  ;;  %v1250_v37 = vsel %vm1234_vm1, inf, %v1202_v10 }
 0x6b5   : > { %v1266_v38 = vsel %vm648_vm3, %v1250_v37, inf }
 0x6b6   : > { %1267 = vmin.xlane.f32.xlu2 %v1266_v38 }
 0x6ba   : > { %v1223_v56 = vpop.xlane.xlu1 %1222 }
 0x6bb   : > { %vm1235_vm11 = vcmp.eq.f32.partialorder %v1203_v13, %v1223_v56 }
 0x6bc   : > { %vm2920_vm14 = vmor %vm2864_vm4, %vm1235_vm11  ;;  %v1251_v42 = vsel %vm1235_vm11, inf, %v1203_v13 }
 0x6bd   : > { %v1269_v43 = vsel %vm648_vm3, %v1251_v42, inf }
 0x6be   : > { %1270 = vmin.xlane.f32.xlu0 %v1269_v43 }
 0x6c2   : > { %v1226_v49 = vpop.xlane.xlu0 %1225 }
 0x6c3   : > { %vm1236_vm12 = vcmp.eq.f32.partialorder %v1204_v20, %v1226_v49 }
 0x6c4   : > { %vm2927_vm9 = vmor %vm2871_vm8, %vm1236_vm12  ;;  %v1252_v47 = vsel %vm1236_vm12, inf, %v1204_v20 }
 0x6c5   : > { %v1272_v15 = vsel %vm648_vm3, %v1252_v47, inf }
 0x6c6   : > { %1273 = vmin.xlane.f32.xlu2 %v1272_v15 }
 0x709   : > { %v1256_v46 = vpop.xlane.xlu2 %1255 }
 0x70a   : > { %vm1278_vm4 = vcmp.eq.f32.partialorder %v1246_v36, %v1256_v46 }
 0x70b   : > { %vm2934_vm10 = vmor %vm2878_vm6, %vm1278_vm4  ;;  %v1294_v0 = vsel %vm1278_vm4, inf, %v1246_v36 }
 0x70c   : > { %v1302_v1 = vsel %vm648_vm3, %v1294_v0, inf }
 0x70d   : > { %1303 = vmin.xlane.f32.xlu1 %v1302_v1 }
 0x711   : > { %v1229_v2 = vpop.xlane.xlu2 %1228  ;;  %v1259_v3 = vpop.xlane.xlu1 %1258 }
 0x712   : > { %vm1237_vm8 = vcmp.eq.f32.partialorder %v1205_v31, %v1229_v2  ;;  %vm1279_vm0 = vcmp.eq.f32.partialorder %v1247_v25, %v1259_v3 }
 0x713   : > { %vm2941_vm1 = vmor %vm2891_vm15, %vm1237_vm8  ;;  %v1253_v54 = vsel %vm1237_vm8, inf, %v1205_v31  ;;  %v1295_v23 = vsel %vm1279_vm0, inf, %v1247_v25 }
 0x714   : > { %vm2947_vm6 = vmor %vm2885_vm7, %vm1279_vm0  ;;  %v1275_v4 = vsel %vm648_vm3, %v1253_v54, inf  ;;  %v1305_v7 = vsel %vm648_vm3, %v1295_v23, inf }
 0x715   : > { %1276 = vmin.xlane.f32.xlu1 %v1275_v4  ;;  %1306 = vmin.xlane.f32.xlu0 %v1305_v7 }
 0x719   : > { %v1262_v8 = vpop.xlane.xlu0 %1261 }
 0x71a   : > { %vm1280_vm11 = vcmp.eq.f32.partialorder %v1248_v28, %v1262_v8 }
 0x71b   : > { %vm2955_vm15 = vmor %vm2899_vm5, %vm1280_vm11  ;;  %v1296_v11 = vsel %vm1280_vm11, inf, %v1248_v28 }
 0x71c   : > { %v1308_v12 = vsel %vm648_vm3, %v1296_v11, inf }
 0x71d   : > { %1309 = vmin.xlane.f32.xlu2 %v1308_v12 }
 0x721   : > { %v1265_v58 = vpop.xlane.xlu1 %1264 }
 0x722   : > { %vm1281_vm7 = vcmp.eq.f32.partialorder %v1249_v34, %v1265_v58 }
 0x723   : > { %vm2962_vm12 = vmor %vm2906_vm13, %vm1281_vm7  ;;  %v1297_v16 = vsel %vm1281_vm7, inf, %v1249_v34  ;;  %v524_v34 = vld [vmem:[%s424_s24] sm:$0x1] }
 0x724   : > { %v1311_v18 = vsel %vm648_vm3, %v1297_v16, inf }
 0x725   : > { %1312 = vmin.xlane.f32.xlu0 %v1311_v18 }
 0x729   : > { %v1268_v9 = vpop.xlane.xlu2 %1267 }
 0x72a   : > { %vm1282_vm5 = vcmp.eq.f32.partialorder %v1250_v37, %v1268_v9 }
 0x72b   : > { %vm2969_vm4 = vmor %vm2913_vm2, %vm1282_vm5  ;;  %v1298_v26 = vsel %vm1282_vm5, inf, %v1250_v37 }
 0x72c   : > { %v1314_v27 = vsel %vm648_vm3, %v1298_v26, inf }
 0x72d   : > { %1315 = vmin.xlane.f32.xlu1 %v1314_v27 }
 0x731   : > { %v1271_v33 = vpop.xlane.xlu0 %1270 }
 0x732   : > { %vm1283_vm13 = vcmp.eq.f32.partialorder %v1251_v42, %v1271_v33 }
 0x733   : > { %vm2976_vm8 = vmor %vm2920_vm14, %vm1283_vm13  ;;  %v1299_v21 = vsel %vm1283_vm13, inf, %v1251_v42 }
 0x734   : > { %v1317_v19 = vsel %vm648_vm3, %v1299_v21, inf }
 0x735   : > { %1318 = vmin.xlane.f32.xlu2 %v1317_v19 }
 0x739   : > { %v1274_v62 = vpop.xlane.xlu2 %1273 }
 0x73a   : > { %vm1284_vm2 = vcmp.eq.f32.partialorder %v1252_v47, %v1274_v62 }
 0x73b   : > { %vm2983_vm0 = vmor %vm2927_vm9, %vm1284_vm2  ;;  %v1300_v25 = vsel %vm1284_vm2, inf, %v1252_v47 }
 0x73c   : > { %v1320_v31 = vsel %vm648_vm3, %v1300_v25, inf }
 0x73d   : > { %1321 = vmin.xlane.f32.xlu1 %v1320_v31 }
 0x780   : > { %v1304_v24 = vpop.xlane.xlu1 %1303 }
 0x781   : > { %vm1326_vm14 = vcmp.eq.f32.partialorder %v1294_v0, %v1304_v24 }
 0x782   : > { %vm2990_vm11 = vmor %vm2934_vm10, %vm1326_vm14  ;;  %v1342_v44 = vsel %vm1326_vm14, inf, %v1294_v0 }
 0x783   : > { %v1350_v48 = vsel %vm648_vm3, %v1342_v44, inf }
 0x784   : > { %1351 = vmin.xlane.f32.xlu0 %v1350_v48 }
 0x788   : > { %v1307_v40 = vpop.xlane.xlu0 %1306  ;;  %v1277_v28 = vpop.xlane.xlu1 %1276 }
 0x789   : > { %vm1327_vm9 = vcmp.eq.f32.partialorder %v1295_v23, %v1307_v40  ;;  %vm1285_vm7 = vcmp.eq.f32.partialorder %v1253_v54, %v1277_v28 }
 0x78a   : > { %vm2997_vm5 = vmor %vm2947_vm6, %vm1327_vm9  ;;  %v1343_v52 = vsel %vm1327_vm9, inf, %v1295_v23  ;;  %v1301_v50 = vsel %vm1285_vm7, inf, %v1253_v54 }
 0x78b   : > { %vm3003_vm10 = vmor %vm2941_vm1, %vm1285_vm7  ;;  %v1353_v35 = vsel %vm648_vm3, %v1343_v52, inf  ;;  %v1323_v53 = vsel %vm648_vm3, %v1301_v50, inf }
 0x78c   : > { %1354 = vmin.xlane.f32.xlu2 %v1353_v35  ;;  %1324 = vmin.xlane.f32.xlu0 %v1323_v53 }
 0x790   : > { %v1310_v60 = vpop.xlane.xlu2 %1309 }
 0x791   : > { %vm1328_vm13 = vcmp.eq.f32.partialorder %v1296_v11, %v1310_v60 }
 0x792   : > { %vm3011_vm6 = vmor %vm2955_vm15, %vm1328_vm13  ;;  %v1344_v38 = vsel %vm1328_vm13, inf, %v1296_v11 }
 0x793   : > { %v1356_v56 = vsel %vm648_vm3, %v1344_v38, inf }
 0x794   : > { %1357 = vmin.xlane.f32.xlu1 %v1356_v56 }
 0x798   : > { %v1313_v5 = vpop.xlane.xlu0 %1312 }
 0x799   : > { %vm1329_vm1 = vcmp.eq.f32.partialorder %v1297_v16, %v1313_v5 }
 0x79a   : > { %vm3018_vm2 = vmor %vm2962_vm12, %vm1329_vm1  ;;  %v1345_v43 = vsel %vm1329_vm1, inf, %v1297_v16 }
 0x79b   : > { %v1359_v49 = vsel %vm648_vm3, %v1345_v43, inf }
 0x79c   : > { %1360 = vmin.xlane.f32.xlu2 %v1359_v49 }
 0x7a0   : > { %v1316_v59 = vpop.xlane.xlu1 %1315 }
 0x7a1   : > { %vm1330_vm15 = vcmp.eq.f32.partialorder %v1298_v26, %v1316_v59 }
 0x7a2   : > { %vm3025_vm14 = vmor %vm2969_vm4, %vm1330_vm15  ;;  %v1346_v15 = vsel %vm1330_vm15, inf, %v1298_v26 }
 0x7a3   : > { %v1362_v46 = vsel %vm648_vm3, %v1346_v15, inf }
 0x7a4   : > { %1363 = vmin.xlane.f32.xlu0 %v1362_v46 }
 0x7a8   : > { %v1319_v63 = vpop.xlane.xlu2 %1318 }
 0x7a9   : > { %vm1331_vm12 = vcmp.eq.f32.partialorder %v1299_v21, %v1319_v63 }
 0x7aa   : > { %vm3032_vm9 = vmor %vm2976_vm8, %vm1331_vm12  ;;  %v1347_v1 = vsel %vm1331_vm12, inf, %v1299_v21 }
 0x7ab   : > { %v1365_v2 = vsel %vm648_vm3, %v1347_v1, inf }
 0x7ac   : > { %1366 = vmin.xlane.f32.xlu1 %v1365_v2 }
 0x7b0   : > { %v1322_v3 = vpop.xlane.xlu1 %1321 }
 0x7b1   : > { %vm1332_vm4 = vcmp.eq.f32.partialorder %v1300_v25, %v1322_v3 }
 0x7b2   : > { %vm3039_vm7 = vmor %vm2983_vm0, %vm1332_vm4  ;;  %v1348_v54 = vsel %vm1332_vm4, inf, %v1300_v25 }
 0x7b3   : > { %v1368_v23 = vsel %vm648_vm3, %v1348_v54, inf }
 0x7b4   : > { %1369 = vmin.xlane.f32.xlu0 %v1368_v23 }
 0x7f7   : > { %v1352_v55 = vpop.xlane.xlu0 %1351 }
 0x7f8   : > { %vm1374_vm8 = vcmp.eq.f32.partialorder %v1342_v44, %v1352_v55 }
 0x7f9   : > { %vm3046_vm13 = vmor %vm2990_vm11, %vm1374_vm8  ;;  %v1390_v7 = vsel %vm1374_vm8, inf, %v1342_v44  ;;  %v725_v44 = vmul.f32 -10.0, %v2323_v17 }
 0x7fa   : > { %v1398_v8 = vsel %vm648_vm3, %v1390_v7, inf }
 0x7fb   : > { %1399 = vmin.xlane.f32.xlu2 %v1398_v8  ;;  %v740_v30 = vmul.f32 1.442695, %v725_v44 }
 0x7fd   : > { %2054 = vpow2.f32 %v740_v30 }
 0x7ff   : > { %v1355_v10 = vpop.xlane.xlu2 %1354  ;;  %v1325_v11 = vpop.xlane.xlu0 %1324 }
 0x800   : > { %vm1375_vm0 = vcmp.eq.f32.partialorder %v1343_v52, %v1355_v10  ;;  %vm1333_vm1 = vcmp.eq.f32.partialorder %v1301_v50, %v1325_v11  ;;  %v525_v10 = vld [vmem:[%s427_s27] sm:$0x1] }
 0x801   : > { %vm3053_vm15 = vmor %vm2997_vm5, %vm1375_vm0  ;;  %v1391_v58 = vsel %vm1375_vm0, inf, %v1343_v52  ;;  %v1349_v13 = vsel %vm1333_vm1, inf, %v1301_v50 }
 0x802   : > { %vm3059_vm11 = vmor %vm3003_vm10, %vm1333_vm1  ;;  %v1401_v18 = vsel %vm648_vm3, %v1391_v58, inf  ;;  %v1371_v9 = vsel %vm648_vm3, %v1349_v13, inf }
 0x803   : > { %1402 = vmin.xlane.f32.xlu1 %v1401_v18  ;;  %1372 = vmin.xlane.f32.xlu2 %v1371_v9 }
 0x807   : > { %v1358_v20 = vpop.xlane.xlu1 %1357 }
 0x808   : > { %vm1376_vm12 = vcmp.eq.f32.partialorder %v1344_v38, %v1358_v20 }
 0x809   : > { %vm3067_vm5 = vmor %vm3011_vm6, %vm1376_vm12  ;;  %v1392_v27 = vsel %vm1376_vm12, inf, %v1344_v38 }
 0x80a   : > { %v1404_v33 = vsel %vm648_vm3, %v1392_v27, inf }
 0x80b   : > { %1405 = vmin.xlane.f32.xlu0 %v1404_v33 }
 0x80f   : > { %v1361_v36 = vpop.xlane.xlu2 %1360 }
 0x810   : > { %vm1377_vm10 = vcmp.eq.f32.partialorder %v1345_v43, %v1361_v36 }
 0x811   : > { %vm3074_vm4 = vmor %vm3018_vm2, %vm1377_vm10  ;;  %v1393_v19 = vsel %vm1377_vm10, inf, %v1345_v43 }
 0x812   : > { %v1407_v62 = vsel %vm648_vm3, %v1393_v19, inf }
 0x813   : > { %1408 = vmin.xlane.f32.xlu1 %v1407_v62 }
 0x817   : > { %v1364_v39 = vpop.xlane.xlu0 %1363 }
 0x818   : > { %vm1378_vm6 = vcmp.eq.f32.partialorder %v1346_v15, %v1364_v39 }
 0x819   : > { %vm3081_vm8 = vmor %vm3025_vm14, %vm1378_vm6  ;;  %v1394_v31 = vsel %vm1378_vm6, inf, %v1346_v15 }
 0x81a   : > { %v1410_v24 = vsel %vm648_vm3, %v1394_v31, inf }
 0x81b   : > { %1411 = vmin.xlane.f32.xlu2 %v1410_v24 }
 0x81f   : > { %v1367_v45 = vpop.xlane.xlu1 %1366 }
 0x820   : > { %vm1379_vm2 = vcmp.eq.f32.partialorder %v1347_v1, %v1367_v45 }
 0x821   : > { %vm3088_vm0 = vmor %vm3032_vm9, %vm1379_vm2  ;;  %v1395_v48 = vsel %vm1379_vm2, inf, %v1347_v1  ;;  %vm3616_vm9 = vcmask 130048   ;;  %v2102_v1 = vmov 0  }
 0x822   : > { %v1413_v40 = vsel %vm648_vm3, %v1395_v48, inf  ;;  %1994 = vmatmul.msk.f32.vlgmr.msrb.gmra.mxu0 %vm3616_vm9, %v524_v34  ;;  %2050 = vset.pattern.permute.xlu2 %v2102_v1 }
 0x823   : > { %1414 = vmin.xlane.f32.xlu0 %v1413_v40 }
 0x824   : > { %2051 = vset.pattern.permute.xlu0 %v2102_v1  ;;  %v1646_v1 = vld [vmem:[%s432_s16 + $0x8] sm:$0xff] }
 0x825   : > { %1727 = vmatpush.msra.mxu1 %v1646_v1 }
 0x827   : > { %v1370_v28 = vpop.xlane.xlu0 %1369 }
 0x828   : > { %vm1380_vm14 = vcmp.eq.f32.partialorder %v1348_v54, %v1370_v28 }
 0x829   : > { %vm3095_vm1 = vmor %vm3039_vm7, %vm1380_vm14  ;;  %v1396_v52 = vsel %vm1380_vm14, inf, %v1348_v54 }
 0x82a   : > { %v1416_v50 = vsel %vm648_vm3, %v1396_v52, inf }
 0x82b   : > { %1417 = vmin.xlane.f32.xlu2 %v1416_v50 }
 0x86e   : > { %v1400_v35 = vpop.xlane.xlu2 %1399 }
 0x86f   : > { %vm1422_vm12 = vcmp.eq.f32.partialorder %v1390_v7, %v1400_v35 }
 0x870   : > { %vm3107_vm10 = vmor %vm3046_vm13, %vm1422_vm12  ;;  %v1438_v60 = vsel %vm1422_vm12, inf, %v1390_v7 }
 0x871   : > { %v1446_v37 = vsel %vm648_vm3, %v1438_v60, inf }
 0x872   : > { %1447 = vmin.xlane.f32.xlu1 %v1446_v37 }
 0x876   : > { %v1373_v38 = vpop.xlane.xlu2 %1372  ;;  %v1403_v56 = vpop.xlane.xlu1 %1402 }
 0x877   : > { %vm1381_vm7 = vcmp.eq.f32.partialorder %v1349_v13, %v1373_v38  ;;  %vm1423_vm6 = vcmp.eq.f32.partialorder %v1391_v58, %v1403_v56  ;;  %v2055_v56 = vpop.eup %2054 }
 0x878   : > { %vm3114_vm2 = vmor %vm3059_vm11, %vm1381_vm7  ;;  %v1397_v42 = vsel %vm1381_vm7, inf, %v1349_v13  ;;  %v1439_v43 = vsel %vm1423_vm6, inf, %v1391_v58 }
 0x879   : > { %vm3120_vm13 = vmor %vm3053_vm15, %vm1423_vm6  ;;  %v1419_v59 = vsel %vm648_vm3, %v1397_v42, inf  ;;  %v1449_v47 = vsel %vm648_vm3, %v1439_v43, inf }
 0x87a   : > { %1420 = vmin.xlane.f32.xlu1 %v1419_v59  ;;  %1450 = vmin.xlane.f32.xlu0 %v1449_v47 }
 0x87e   : > { %v1406_v15 = vpop.xlane.xlu0 %1405 }
 0x87f   : > { %vm1424_vm14 = vcmp.eq.f32.partialorder %v1392_v27, %v1406_v15 }
 0x880   : > { %vm3128_vm11 = vmor %vm3067_vm5, %vm1424_vm14  ;;  %v1440_v63 = vsel %vm1424_vm14, inf, %v1392_v27 }
 0x881   : > { %v1452_v0 = vsel %vm648_vm3, %v1440_v63, inf }
 0x882   : > { %1453 = vmin.xlane.f32.xlu2 %v1452_v0 }
 0x886   : > { %v1409_v2 = vpop.xlane.xlu1 %1408 }
 0x887   : > { %vm1425_vm15 = vcmp.eq.f32.partialorder %v1393_v19, %v1409_v2 }
 0x888   : > { %vm3135_vm9 = vmor %vm3074_vm4, %vm1425_vm15  ;;  %v1441_v57 = vsel %vm1425_vm15, inf, %v1393_v19 }
 0x889   : > { %v1455_v54 = vsel %vm648_vm3, %v1441_v57, inf }
 0x88a   : > { %1456 = vmin.xlane.f32.xlu0 %v1455_v54 }
 0x88e   : > { %v1412_v23 = vpop.xlane.xlu2 %1411 }
 0x88f   : > { %vm1426_vm5 = vcmp.eq.f32.partialorder %v1394_v31, %v1412_v23  ;;  %v719_v23 = vmul.f32 -10.0, %v2262_v22 }
 0x890   : > { %vm3142_vm12 = vmor %vm3081_vm8, %vm1426_vm5  ;;  %v1442_v4 = vsel %vm1426_vm5, inf, %v1394_v31 }
 0x891   : > { %v1458_v7 = vsel %vm648_vm3, %v1442_v4, inf  ;;  %v728_v55 = vmul.f32 1.442695, %v719_v23 }
 0x892   : > { %1459 = vmin.xlane.f32.xlu1 %v1458_v7 }
 0x896   : > { %v1415_v8 = vpop.xlane.xlu0 %1414 }
 0x897   : > { %vm1427_vm4 = vcmp.eq.f32.partialorder %v1395_v48, %v1415_v8 }
 0x898   : > { %vm3153_vm7 = vmor %vm3088_vm0, %vm1427_vm4  ;;  %v1443_v12 = vsel %vm1427_vm4, inf, %v1395_v48 }
 0x899   : > { %v1461_v58 = vsel %vm648_vm3, %v1443_v12, inf }
 0x89a   : > { %1462 = vmin.xlane.f32.xlu0 %v1461_v58  ;;  %528 = vperm.xlu2 %2050, %v525_v10   ;;  %v720_v10 = vmul.f32 -10.0, %v2271_v32  ;;  %v721_v32 = vmul.f32 -10.0, %v2281_v41 }
 0x89c   : > { %v730_v22 = vmul.f32 1.442695, %v720_v10  ;;  %v732_v41 = vmul.f32 1.442695, %v721_v32 }
 0x89e   : > { %v1418_v13 = vpop.xlane.xlu2 %1417 }
 0x89f   : > { %vm1428_vm8 = vcmp.eq.f32.partialorder %v1396_v52, %v1418_v13 }
 0x8a0   : > { %vm3160_vm6 = vmor %vm3095_vm1, %vm1428_vm8  ;;  %v1444_v18 = vsel %vm1428_vm8, inf, %v1396_v52  ;;  %v552_v52 = vpop.f32.mrf.mxu0 }
 0x8a1   : > { %v1464_v9 = vsel %vm648_vm3, %v1444_v18, inf }
 0x8a2   : > { %1465 = vmin.xlane.f32.xlu0 %v1464_v9 }
 0x8e5   : > { %v1448_v20 = vpop.xlane.xlu1 %1447 }
 0x8e6   : > { %vm1470_vm0 = vcmp.eq.f32.partialorder %v1438_v60, %v1448_v20 }
 0x8e7   : > { %vm3167_vm14 = vmor %vm3107_vm10, %vm1470_vm0  ;;  %v3171_v27 = vsel %vm1470_vm0, inf, %v1438_v60 }
 0x8e8   : > { %v1494_v33 = vsel %vm648_vm3, %v3171_v27, inf }
 0x8e9   : > { %1495 = vmin.xlane.f32.xlu1 %v1494_v33 }
 0x8ed   : > { %v1451_v36 = vpop.xlane.xlu0 %1450  ;;  %v1421_v21 = vpop.xlane.xlu1 %1420 }
 0x8ee   : > { %vm1471_vm1 = vcmp.eq.f32.partialorder %v1439_v43, %v1451_v36  ;;  %vm1429_vm15 = vcmp.eq.f32.partialorder %v1397_v42, %v1421_v21 }
 0x8ef   : > { %vm3177_vm5 = vmor %vm3120_vm13, %vm1471_vm1  ;;  %v3181_v62 = vsel %vm1429_vm15, inf, %v1397_v42  ;;  %v3183_v39 = vsel %vm1471_vm1, inf, %v1439_v43 }
 0x8f0   : > { %vm3187_vm10 = vmor %vm3114_vm2, %vm1429_vm15  ;;  %v1497_v31 = vsel %vm648_vm3, %v3183_v39, inf  ;;  %v1467_v24 = vsel %vm648_vm3, %v3181_v62, inf }
 0x8f1   : > { %1498 = vmin.xlane.f32.xlu1 %v1497_v31  ;;  %1468 = vmin.xlane.f32.xlu0 %v1467_v24  ;;  %v722_v31 = vmul.f32 -10.0, %v2291_v51 }
 0x8f3   : > { %v734_v48 = vmul.f32 1.442695, %v722_v31 }
 0x8f5   : > { %v1454_v45 = vpop.xlane.xlu2 %1453 }
 0x8f6   : > { %vm1472_vm13 = vcmp.eq.f32.partialorder %v1440_v63, %v1454_v45 }
 0x8f7   : > { %vm3198_vm4 = vmor %vm3128_vm11, %vm1472_vm13  ;;  %v3202_v40 = vsel %vm1472_vm13, inf, %v1440_v63 }
 0x8f8   : > { %v1500_v28 = vsel %vm648_vm3, %v3202_v40, inf }
 0x8f9   : > { %1501 = vmin.xlane.f32.xlu1 %v1500_v28 }
 0x8fd   : > { %v529_v50 = vpop.permute.xlu2 %528  ;;  %v1457_v34 = vpop.xlane.xlu0 %1456 }
 0x8fe   : > { %v531_v35 = vperm.slane %v529_v50, 0  ;;  %vm1473_vm2 = vcmp.eq.f32.partialorder %v1441_v57, %v1457_v34 }
 0x8ff   : > { %vm3208_vm8 = vmor %vm3135_vm9, %vm1473_vm2  ;;  %v3212_v53 = vsel %vm1473_vm2, inf, %v1441_v57  ;;  %v718_v57 = vmul.f32 -10.0, %v2255_v14 }
 0x900   : > { %v553_v60 = vadd.f32 %v552_v52, %v531_v35  ;;  %v1503_v37 = vsel %vm648_vm3, %v3212_v53, inf }
 0x901   : > { %1504 = vmin.xlane.f32.xlu2 %v1503_v37  ;;  %v726_v54 = vmul.f32 1.442695, %v718_v57 }
 0x902   : > { %v3216_v38 = vperm.slane %v553_v60, 0 }
 0x903   : > { %2056 = vpow2.f32 %v726_v54 }
 0x904   : > { %v3219_v42 = vmul.f32 %v2055_v56, %v3216_v38  ;;  %2058 = vpow2.f32 %v728_v55 }
 0x905   : > { %v1460_v5 = vpop.xlane.xlu1 %1459  ;;  %2060 = vpow2.f32 %v730_v22 }
 0x906   : > { %vm1474_vm11 = vcmp.eq.f32.partialorder %v1442_v4, %v1460_v5  ;;  %2062 = vpow2.f32 %v732_v41 }
 0x907   : > { %vm3223_vm9 = vmor %vm3142_vm12, %vm1474_vm11  ;;  %v3227_v49 = vsel %vm1474_vm11, inf, %v1442_v4  ;;  %2064 = vpow2.f32 %v734_v48  ;;  %v2091_v48 = vld [vmem:[%s2173_s18 + $0x28] sm:$0xff] }
 0x908   : > { %v1506_v59 = vsel %vm648_vm3, %v3227_v49, inf }
 0x909   : > { %1507 = vmin.xlane.f32.xlu0 %v1506_v59  ;;  %v2057_v4 = vpop.eup %2056 }
 0x90a   : > { %v1535_v8 = vmul.f32 %v2057_v4, %v3216_v38 }
 0x90d   : > { %v1463_v47 = vpop.xlane.xlu0 %1462 }
 0x90e   : > { %vm1475_vm0 = vcmp.eq.f32.partialorder %v1443_v12, %v1463_v47 }
 0x90f   : > { %vm3233_vm1 = vmor %vm3153_vm7, %vm1475_vm0  ;;  %v3237_v46 = vsel %vm1475_vm0, inf, %v1443_v12 }
 0x910   : > { %v1509_v63 = vsel %vm648_vm3, %v3237_v46, inf }
 0x911   : > { %1510 = vmin.xlane.f32.xlu1 %v1509_v63 }
 0x915   : > { %v1466_v0 = vpop.xlane.xlu0 %1465 }
 0x916   : > { %vm1476_vm12 = vcmp.eq.f32.partialorder %v1444_v18, %v1466_v0 }
 0x917   : > { %vm3243_vm15 = vmor %vm3160_vm6, %vm1476_vm12  ;;  %v3247_v2 = vsel %vm1476_vm12, inf, %v1444_v18  ;;  %v2059_v18 = vpop.eup %2058 }
 0x918   : > { %v1512_v3 = vsel %vm648_vm3, %v3247_v2, inf  ;;  %v1536_v20 = vmul.f32 %v2059_v18, %v3216_v38  ;;  %v2061_v21 = vpop.eup %2060 }
 0x919   : > { %1513 = vmin.xlane.f32.xlu0 %v1512_v3  ;;  %v1537_v25 = vmul.f32 %v2061_v21, %v3216_v38  ;;  %v2063_v28 = vpop.eup %2062 }
 0x91a   : > { %v1538_v52 = vmul.f32 %v2063_v28, %v3216_v38  ;;  %v2065_v5 = vpop.eup %2064 }
 0x91b   : > { %v1539_v59 = vmul.f32 %v2065_v5, %v3216_v38 }
 0x95c   : > { %v1496_v7 = vpop.xlane.xlu1 %1495 }
 0x95d   : > { %vm1518_vm7 = vcmp.eq.f32.partialorder %v3171_v27, %v1496_v7 }
 0x95e   : > { %vm1526_vm6 = vmor %vm3167_vm14, %vm1518_vm7 }
 0x95f   : > { %v1575_v11 = vsel %vm1526_vm6, %v1535_v8, -1e+30  ;;  %v1543_v12 = vsel %vm1526_vm6, %v1535_v8, 0.0 }
 0x960   : > { %v1583_v14 = vsel %vm648_vm3, %v1575_v11, -inf  ;;  %v1551_v58 = vsel %vm648_vm3, %v1543_v12, 0.0  ;;  %v2086_v12 = vld [vmem:[%s2173_s18] sm:$0xff] }
 0x961   : > { %1584 = vmax.xlane.f32.xlu1 %v1583_v14  ;;  %1552 = vadd.xlane.f32.xlu0 %v1551_v58  ;;  %v2087_v14 = vld [vmem:[%s2173_s18 + $0x8] sm:$0xff]  ;;  %v2088_v58 = vld [vmem:[%s2173_s18 + $0x10] sm:$0xff] }
 0x964   : > { %v1469_v13 = vpop.xlane.xlu0 %1468  ;;  %v1499_v16 = vpop.xlane.xlu1 %1498 }
 0x965   : > { %vm1477_vm13 = vcmp.eq.f32.partialorder %v3181_v62, %v1469_v13  ;;  %vm1519_vm2 = vcmp.eq.f32.partialorder %v3183_v39, %v1499_v16 }
 0x966   : > { %vm3267_vm14 = vmor %vm3187_vm10, %vm1477_vm13  ;;  %v3288_v24 = vsel %vm1477_vm13, inf, %v3181_v62  ;;  %v723_v62 = vmul.f32 -10.0, %v2301_v61  ;;  %v724_v61 = vmul.f32 -10.0, %v2311_v6 }
 0x967   : > { %vm1527_vm11 = vmor %vm3177_vm5, %vm1519_vm2  ;;  %v1515_v51 = vsel %vm648_vm3, %v3288_v24, inf }
 0x968   : > { %v1544_v26 = vsel %vm1527_vm11, %v1536_v20, 0.0  ;;  %v1576_v27 = vsel %vm1527_vm11, %v1536_v20, -1e+30  ;;  %v736_v56 = vmul.f32 1.442695, %v723_v62  ;;  %vm1626_vm11 = vcmp.eq.s32.totalorder %v2219_v29, 1 }
 0x969   : > { %v1554_v33 = vsel %vm648_vm3, %v1544_v26, 0.0  ;;  %v1586_v36 = vsel %vm648_vm3, %v1576_v27, -inf  ;;  %v738_v3 = vmul.f32 1.442695, %v724_v61  ;;  %v2089_v26 = vld [vmem:[%s2173_s18 + $0x18] sm:$0xff] }
 0x96a   : > { %1555 = vadd.xlane.f32.xlu1 %v1554_v33  ;;  %1587 = vmax.xlane.f32.xlu0 %v1586_v36  ;;  %2066 = vpow2.f32 %v736_v56 }
 0x96b   : > { %2068 = vpow2.f32 %v738_v3 }
 0x96c   : > { %v1502_v39 = vpop.xlane.xlu1 %1501 }
 0x96d   : > { %vm1520_vm10 = vcmp.eq.f32.partialorder %v3202_v40, %v1502_v39 }
 0x96e   : > { %vm3281_vm5 = vmor %vm3198_vm4, %vm1520_vm10  ;;  %vm1607_vm10 = vcmp.eq.s32.totalorder %v2219_v29, 0  ;;  %v2053_v29 = vld [vmem:[%s439_s19] ss:$0 sm:$0xff] }
 0x96f   : > { %v1545_v45 = vsel %vm3281_vm5, %v1537_v25, 0.0  ;;  %v1577_v44 = vsel %vm3281_vm5, %v1537_v25, -1e+30  ;;  %v2090_v25 = vld [vmem:[%s2173_s18 + $0x20] sm:$0xff] }
 0x970   : > { %v1557_v40 = vsel %vm648_vm3, %v1545_v45, 0.0  ;;  %v1589_v37 = vsel %vm648_vm3, %v1577_v44, -inf  ;;  %v2067_v57 = vpop.eup %2066 }
 0x971   : > { %v1540_v23 = vmul.f32 %v2067_v57, %v3216_v38  ;;  %v2069_v4 = vpop.eup %2068 }
 0x972   : > { %1516 = vmin.xlane.f32.xlu1 %v1515_v51  ;;  %1558 = vadd.xlane.f32.xlu0 %v1557_v40  ;;  %v1541_v8 = vmul.f32 %v2069_v4, %v3216_v38  ;;  %v1647_v38 = vld [vmem:[%s436_s13] sm:$0xff] }
 0x973   : > { %1687 = vmatpush.msra.mxu3 %v1647_v38 }
 0x974   : > { %v1505_v30 = vpop.xlane.xlu2 %1504 }
 0x975   : > { %vm1521_vm4 = vcmp.eq.f32.partialorder %v3212_v53, %v1505_v30 }
 0x976   : > { %vm1529_vm0 = vmor %vm3208_vm8, %vm1521_vm4  ;;  %vm3657_vm4 = vcmask 64512  }
 0x977   : > { %v1578_v50 = vsel %vm1529_vm0, %v1538_v52, -1e+30  ;;  %v1546_v34 = vsel %vm1529_vm0, %v1538_v52, 0.0 }
 0x978   : > { %v1560_v35 = vsel %vm648_vm3, %v1546_v34, 0.0  ;;  %v1592_v60 = vsel %vm648_vm3, %v1578_v50, -inf  ;;  %v2092_v50 = vld [vmem:[%s2173_s18 + $0x30] sm:$0xff] }
 0x979   : > { %1561 = vadd.xlane.f32.xlu2 %v1560_v35 }
 0x97a   : > { %1590 = vmax.xlane.f32.xlu1 %v1589_v37  ;;  %1593 = vmax.xlane.f32.xlu0 %v1592_v60 }
 0x97c   : > { %v1508_v53 = vpop.xlane.xlu0 %1507 }
 0x97d   : > { %vm1522_vm12 = vcmp.eq.f32.partialorder %v3227_v49, %v1508_v53  ;;  %v2093_v53 = vld [vmem:[%s2173_s18 + $0x38] sm:$0xff] }
 0x97e   : > { %vm1530_vm8 = vmor %vm3223_vm9, %vm1522_vm12 }
 0x97f   : > { %v1547_v17 = vsel %vm1530_vm8, %v1539_v59, 0.0  ;;  %v1579_v47 = vsel %vm1530_vm8, %v1539_v59, -1e+30  ;;  %vm3659_vm12 = vmmov %vm3657_vm4 }
 0x980   : > { %v1595_v63 = vsel %vm648_vm3, %v1579_v47, -inf  ;;  %v1563_v0 = vsel %vm648_vm3, %v1547_v17, 0.0 }
 0x981   : > { %1596 = vmax.xlane.f32.xlu2 %v1595_v63 }
 0x982   : > { %1564 = vadd.xlane.f32.xlu1 %v1563_v0 }
 0x984   : > { %v1511_v54 = vpop.xlane.xlu1 %1510 }
 0x985   : > { %vm1523_vm7 = vcmp.eq.f32.partialorder %v3237_v46, %v1511_v54 }
 0x986   : > { %vm1531_vm6 = vmor %vm3233_vm1, %vm1523_vm7  ;;  %vm3653_vm1 = vcmask 130048  }
 0x987   : > { %v1548_v6 = vsel %vm1531_vm6, %v1540_v23, 0.0  ;;  %v1580_v43 = vsel %vm1531_vm6, %v1540_v23, -1e+30  ;;  %vm3655_vm2 = vmmov %vm3653_vm1 }
 0x988   : > { %v1598_v49 = vsel %vm648_vm3, %v1580_v43, -inf  ;;  %v1566_v55 = vsel %vm648_vm3, %v1548_v6, 0.0  ;;  %vm3656_vm5 = vmmov %vm3653_vm1 }
 0x989   : > { %1567 = vadd.xlane.f32.xlu0 %v1566_v55  ;;  %vm3658_vm0 = vmmov %vm3653_vm1 }
 0x98a   : > { %1599 = vmax.xlane.f32.xlu1 %v1598_v49  ;;  %vm3660_vm6 = vmmov %vm3658_vm0 }
 0x98c   : > { %v1514_v7 = vpop.xlane.xlu0 %1513 }
 0x98d   : > { %vm1524_vm9 = vcmp.eq.f32.partialorder %v3247_v2, %v1514_v7  ;;  %v1645_v2 = vld [vmem:[%s432_s16] sm:$0xff] }
 0x98e   : > { %vm1532_vm13 = vmor %vm3243_vm15, %vm1524_vm9  ;;  %1728 = vmatpush.msra.mxu1 %v1645_v2 }
 0x98f   : > { %v1581_v15 = vsel %vm1532_vm13, %v1541_v8, -1e+30  ;;  %v1549_v46 = vsel %vm1532_vm13, %v1541_v8, 0.0  ;;  %2019 = vmatmul.msk.f32.vlgmr.msra.gmra.mxu1 %vm3653_vm1, %v2086_v12  ;;  %vm3654_vm15 = vmmov %vm3653_vm1 }
 0x990   : > { %v1569_v10 = vsel %vm648_vm3, %v1549_v46, 0.0  ;;  %v1601_v11 = vsel %vm648_vm3, %v1581_v15, -inf  ;;  %vm3662_vm9 = vmmov %vm3658_vm0 }
 0x991   : > { %1570 = vadd.xlane.f32.xlu2 %v1569_v10  ;;  %1602 = vmax.xlane.f32.xlu0 %v1601_v11  ;;  %vm3663_vm13 = vmmov %vm3657_vm4 }
 0x992   : > { %vm3664_vm1 = vmmov %vm3658_vm0 }
 0x997   : > { %2020 = vmatmul.msk.f32.gmra.mxu1 %vm3654_vm15, %v2087_v14  ;;  %vm3665_vm15 = vmmov %vm3657_vm4 }
 0x99f   : > { %2021 = vmatmul.msk.f32.gmra.mxu1 %vm3655_vm2, %v2088_v58  ;;  %vm3666_vm2 = vmmov %vm3657_vm4 }
 0x9a7   : > { %2022 = vmatmul.msk.f32.gmra.mxu1 %vm3656_vm5, %v2089_v26  ;;  %vm3667_vm5 = vmmov %vm3666_vm2 }
 0x9af   : > { %2023 = vmatmul.msk.f32.gmra.mxu1 %vm3658_vm0, %v2090_v25 }
 0x9b7   : > { %2024 = vmatmul.msk.f32.gmra.mxu1 %vm3660_vm6, %v2091_v48 }
 0x9bf   : > { %2025 = vmatmul.msk.f32.gmra.mxu1 %vm3662_vm9, %v2092_v50  ;;  %vm1838_vm9 = vcmask 517120  }
 0x9c7   : > { %2026 = vmatmul.msk.f32.gmra.mxu1 %vm3664_vm1, %v2093_v53 }
 0x9d4   : > { %v1585_v22 = vpop.xlane.xlu1 %1584  ;;  %v1553_v13 = vpop.xlane.xlu0 %1552 }
 0x9d5   : > { %v1608_v16 = vmul.f32 0.0625, %v1553_v13  ;;  %v1629_v18 = vsel %vm1626_vm11, %v1585_v22, 0.0 }
 0x9d7   : > { %v1618_v32 = vsel %vm1607_vm10, %v1608_v16, 0.0 }
 0x9d8   : > { %v1637_v20 = vadd.f32 %v1629_v18, %v1618_v32 }
 0x9da   : > { %2011 = vmatmul.msk.f32.vlgmr.msra.gmra.mxu3 %vm3657_vm4, %v1637_v20 }
 0x9dd   : > { %v1556_v27 = vpop.xlane.xlu1 %1555  ;;  %v1588_v33 = vpop.xlane.xlu0 %1587 }
 0x9de   : > { %v1609_v36 = vmul.f32 0.0625, %v1556_v27  ;;  %v1630_v21 = vsel %vm1626_vm11, %v1588_v33, 0.0 }
 0x9e0   : > { %v1619_v41 = vsel %vm1607_vm10, %v1609_v36, 0.0 }
 0x9e1   : > { %v1638_v39 = vadd.f32 %v1630_v21, %v1619_v41 }
 0x9e3   : > { %2012 = vmatmul.msk.f32.gmra.mxu3 %vm3659_vm12, %v1638_v39 }
 0x9e5   : > { %v1517_v31 = vpop.xlane.xlu1 %1516  ;;  %v1559_v19 = vpop.xlane.xlu0 %1558 }
 0x9e6   : > { %vm1525_vm8 = vcmp.eq.f32.partialorder %v3288_v24, %v1517_v31  ;;  %v1610_v28 = vmul.f32 0.0625, %v1559_v19 }
 0x9e7   : > { %vm1533_vm7 = vmor %vm3267_vm14, %vm1525_vm8 }
 0x9e8   : > { %v1550_v45 = vsel %vm1533_vm7, %v3219_v42, 0.0  ;;  %v1582_v44 = vsel %vm1533_vm7, %v3219_v42, -1e+30  ;;  %v1620_v30 = vsel %vm1607_vm10, %v1610_v28, 0.0  ;;  %vm3661_vm14 = vmmov %vm3657_vm4 }
 0x9e9   : > { %v1604_v40 = vsel %vm648_vm3, %v1582_v44, -inf  ;;  %v1572_v51 = vsel %vm648_vm3, %v1550_v45, 0.0  ;;  %vm3668_vm4 = vmmov %vm3666_vm2 }
 0x9ea   : > { %1605 = vmax.xlane.f32.xlu2 %v1604_v40  ;;  %1573 = vadd.xlane.f32.xlu1 %v1572_v51 }
 0x9ec   : > { %v1562_v24 = vpop.xlane.xlu2 %1561 }
 0x9ed   : > { %v1591_v9 = vpop.xlane.xlu1 %1590  ;;  %v1611_v62 = vmul.f32 0.0625, %v1562_v24  ;;  %v1594_v34 = vpop.xlane.xlu0 %1593 }
 0x9ee   : > { %v1631_v52 = vsel %vm1626_vm11, %v1591_v9, 0.0  ;;  %v1632_v37 = vsel %vm1626_vm11, %v1594_v34, 0.0 }
 0x9ef   : > { %v1639_v42 = vadd.f32 %v1631_v52, %v1620_v30  ;;  %v1621_v35 = vsel %vm1607_vm10, %v1611_v62, 0.0 }
 0x9f0   : > { %v1640_v56 = vadd.f32 %v1632_v37, %v1621_v35 }
 0x9f1   : > { %2013 = vmatmul.msk.f32.gmra.mxu3 %vm3661_vm14, %v1639_v42 }
 0x9f4   : > { %v1597_v59 = vpop.xlane.xlu2 %1596 }
 0x9f5   : > { %v1565_v60 = vpop.xlane.xlu1 %1564  ;;  %v1633_v47 = vsel %vm1626_vm11, %v1597_v59, 0.0 }
 0x9f6   : > { %v1612_v5 = vmul.f32 0.0625, %v1565_v60 }
 0x9f8   : > { %v1622_v61 = vsel %vm1607_vm10, %v1612_v5, 0.0 }
 0x9f9   : > { %2014 = vmatmul.msk.f32.gmra.mxu3 %vm3663_vm13, %v1640_v56  ;;  %v1641_v63 = vadd.f32 %v1633_v47, %v1622_v61 }
 0x9fc   : > { %v1568_v17 = vpop.xlane.xlu0 %1567 }
 0x9fd   : > { %v1613_v0 = vmul.f32 0.0625, %v1568_v17  ;;  %v1600_v3 = vpop.xlane.xlu1 %1599 }
 0x9fe   : > { %v1634_v23 = vsel %vm1626_vm11, %v1600_v3, 0.0 }
 0x9ff   : > { %v1623_v57 = vsel %vm1607_vm10, %v1613_v0, 0.0 }
 0xa00   : > { %v1642_v6 = vadd.f32 %v1634_v23, %v1623_v57 }
 0xa01   : > { %2015 = vmatmul.msk.f32.gmra.mxu3 %vm3665_vm15, %v1641_v63 }
 0xa04   : > { %v1571_v54 = vpop.xlane.xlu2 %1570  ;;  %v1603_v49 = vpop.xlane.xlu0 %1602 }
 0xa05   : > { %v1614_v43 = vmul.f32 0.0625, %v1571_v54  ;;  %v1635_v4 = vsel %vm1626_vm11, %v1603_v49, 0.0 }
 0xa07   : > { %v1624_v55 = vsel %vm1607_vm10, %v1614_v43, 0.0 }
 0xa08   : > { %v1643_v7 = vadd.f32 %v1635_v4, %v1624_v55 }
 0xa09   : > { %2016 = vmatmul.msk.f32.gmra.mxu3 %vm3666_vm2, %v1642_v6 }
 0xa0c   : > { %v1730_v8 = vpop.f32.mrf.mxu1 }
 0xa11   : > { %2017 = vmatmul.msk.f32.gmra.mxu3 %vm3667_vm5, %v1643_v7 }
 0xa14   : > { %v1733_v58 = vpop.f32.mrf.mxu1 }
 0xa1c   : > { %v1736_v13 = vpop.f32.mrf.mxu1 }
 0xa24   : > { %v1739_v18 = vpop.f32.mrf.mxu1 }
 0xa2c   : > { %v1742_v20 = vpop.f32.mrf.mxu1 }
 0xa34   : > { %v1745_v27 = vpop.f32.mrf.mxu1 }
 0xa3c   : > { %v1748_v36 = vpop.f32.mrf.mxu1 }
 0xa44   : > { %v1751_v45 = vpop.f32.mrf.mxu1 }
 0xa5d   : > { %v1606_v15 = vpop.xlane.xlu2 %1605  ;;  %v1574_v46 = vpop.xlane.xlu1 %1573 }
 0xa5e   : > { %v1615_v10 = vmul.f32 0.0625, %v1574_v46  ;;  %v1689_v11 = vpop.f32.mrf.mxu3  ;;  %v1636_v1 = vsel %vm1626_vm11, %v1606_v15, 0.0 }
 0xa5f   : > { %v1731_v38 = vadd.f32 %v1730_v8, %v1689_v11 }
 0xa60   : > { %v1625_v2 = vsel %vm1607_vm10, %v1615_v10, 0.0 }
 0xa61   : > { %v1644_v12 = vadd.f32 %v1636_v1, %v1625_v2  ;;  %v1758_v56 = vadd.f32 %v2053_v29, %v1731_v38 }
 0xa63   : > { %2018 = vmatmul.msk.f32.gmra.mxu3 %vm3668_vm4, %v1644_v12  ;;  %v1774_v47 = vmin.f32 %v1758_v56, 0.0  ;;  %vm1766_vm14 = vcmp.gt.f32.partialorder %v1758_v56, 0.0 }
 0xa65   : > { %v1782_v23 = vmul.f32 1.442695, %v1774_v47 }
 0xa66   : > { %v1692_v14 = vpop.f32.mrf.mxu3 }
 0xa67   : > { %v1734_v24 = vadd.f32 %v1733_v58, %v1692_v14 }
 0xa69   : > { %v1759_v35 = vadd.f32 %v2053_v29, %v1734_v24 }
 0xa6b   : > { %v1775_v61 = vmin.f32 %v1759_v35, 0.0  ;;  %vm1767_vm6 = vcmp.gt.f32.partialorder %v1759_v35, 0.0 }
 0xa6d   : > { %v1784_v3 = vmul.f32 1.442695, %v1775_v61 }
 0xa74   : > { %v1695_v22 = vpop.f32.mrf.mxu3 }
 0xa75   : > { %v1737_v44 = vadd.f32 %v1736_v13, %v1695_v22 }
 0xa77   : > { %v1760_v52 = vadd.f32 %v2053_v29, %v1737_v44 }
 0xa79   : > { %v1776_v5 = vmin.f32 %v1760_v52, 0.0  ;;  %vm1768_vm7 = vcmp.gt.f32.partialorder %v1760_v52, 0.0 }
 0xa7b   : > { %v1786_v63 = vmul.f32 1.442695, %v1776_v5 }
 0xa7c   : > { %v1698_v16 = vpop.f32.mrf.mxu3 }
 0xa7d   : > { %v1740_v19 = vadd.f32 %v1739_v18, %v1698_v16  ;;  %v1814_v18 = vld [vmem:[%s3426_s8] sm:$0x3] }
 0xa7f   : > { %v1761_v9 = vadd.f32 %v2053_v29, %v1740_v19 }
 0xa81   : > { %v1777_v60 = vmin.f32 %v1761_v9, 0.0  ;;  %vm1769_vm8 = vcmp.gt.f32.partialorder %v1761_v9, 0.0 }
 0xa83   : > { %v1788_v17 = vmul.f32 1.442695, %v1777_v60 }
 0xa84   : > { %v1701_v32 = vpop.f32.mrf.mxu3 }
 0xa85   : > { %v1743_v39 = vadd.f32 %v1742_v20, %v1701_v32 }
 0xa87   : > { %v1762_v40 = vadd.f32 %v2053_v29, %v1743_v39 }
 0xa89   : > { %v1778_v42 = vmin.f32 %v1762_v40, 0.0  ;;  %vm1770_vm12 = vcmp.gt.f32.partialorder %v1762_v40, 0.0 }
 0xa8b   : > { %v1790_v59 = vmul.f32 1.442695, %v1778_v42 }
 0xa8c   : > { %v1704_v26 = vpop.f32.mrf.mxu3 }
 0xa8d   : > { %v1746_v21 = vadd.f32 %v1745_v27, %v1704_v26 }
 0xa8f   : > { %v1763_v31 = vadd.f32 %v2053_v29, %v1746_v21 }
 0xa91   : > { %v1779_v48 = vmin.f32 %v1763_v31, 0.0  ;;  %vm1771_vm0 = vcmp.gt.f32.partialorder %v1763_v31, 0.0 }
 0xa93   : > { %v1792_v34 = vmul.f32 1.442695, %v1779_v48 }
 0xa94   : > { %v1707_v33 = vpop.f32.mrf.mxu3 }
 0xa95   : > { %v1749_v41 = vadd.f32 %v1748_v36, %v1707_v33 }
 0xa97   : > { %v1764_v25 = vadd.f32 %v2053_v29, %v1749_v41 }
 0xa99   : > { %v1780_v51 = vmin.f32 %v1764_v25, 0.0  ;;  %vm1772_vm10 = vcmp.gt.f32.partialorder %v1764_v25, 0.0 }
 0xa9b   : > { %v1794_v50 = vmul.f32 1.442695, %v1780_v51 }
 0xa9d   : > { %2070 = vpow2.f32 %v1794_v50 }
 0xa9e   : > { %2072 = vpow2.f32 %v1792_v34 }
 0xaa3   : > { %v2071_v0 = vpop.eup %2070 }
 0xaa4   : > { %v2073_v57 = vpop.eup %2072  ;;  %v2033_v43 = vadd.f32 -1.0, %v2071_v0 }
 0xaa5   : > { %v2032_v4 = vadd.f32 -1.0, %v2073_v57 }
 0xaa6   : > { %v1812_v8 = vsel %vm1772_vm10, %v1764_v25, %v2033_v43 }
 0xaa7   : > { %v1811_v10 = vsel %vm1771_vm0, %v1763_v31, %v2032_v4 }
 0xae6   : > { %v1710_v28 = vpop.f32.mrf.mxu3 }
 0xae7   : > { %v1752_v30 = vadd.f32 %v1751_v45, %v1710_v28 }
 0xae9   : > { %v1765_v62 = vadd.f32 %v2053_v29, %v1752_v30 }
 0xaeb   : > { %v1781_v37 = vmin.f32 %v1765_v62, 0.0  ;;  %vm1773_vm11 = vcmp.gt.f32.partialorder %v1765_v62, 0.0 }
 0xaed   : > { %v1796_v53 = vmul.f32 1.442695, %v1781_v37 }
 0xaef   : > { %2074 = vpow2.f32 %v1796_v53 }
 0xaf0   : > { %2076 = vpow2.f32 %v1790_v59 }
 0xaf1   : > { %2078 = vpow2.f32 %v1788_v17 }
 0xaf2   : > { %2080 = vpow2.f32 %v1786_v63 }
 0xaf3   : > { %2082 = vpow2.f32 %v1784_v3 }
 0xaf4   : > { %2084 = vpow2.f32 %v1782_v23 }
 0xaf5   : > { %v2075_v54 = vpop.eup %2074 }
 0xaf6   : > { %v2034_v6 = vadd.f32 -1.0, %v2075_v54  ;;  %v2077_v49 = vpop.eup %2076 }
 0xaf7   : > { %v2079_v7 = vpop.eup %2078  ;;  %v2031_v15 = vadd.f32 -1.0, %v2077_v49 }
 0xaf8   : > { %v1813_v55 = vsel %vm1773_vm11, %v1765_v62, %v2034_v6  ;;  %v2081_v46 = vpop.eup %2080  ;;  %v2030_v11 = vadd.f32 -1.0, %v2079_v7 }
 0xaf9   : > { %1826 = vmatpush.msrb.mxu3 %v1813_v55  ;;  %v2083_v38 = vpop.eup %2082  ;;  %v1810_v1 = vsel %vm1770_vm12, %v1762_v40, %v2031_v15  ;;  %v2029_v2 = vadd.f32 -1.0, %v2081_v46 }
 0xafa   : > { %v2085_v12 = vpop.eup %2084  ;;  %v1809_v14 = vsel %vm1769_vm8, %v1761_v9, %v2030_v11  ;;  %v2028_v58 = vadd.f32 -1.0, %v2083_v38 }
 0xafb   : > { %1827 = vmatpush.msrb.mxu3 %v1812_v8  ;;  %v1808_v22 = vsel %vm1768_vm7, %v1760_v52, %v2029_v2  ;;  %v2027_v13 = vadd.f32 -1.0, %v2085_v12 }
 0xafc   : > { %v1807_v16 = vsel %vm1767_vm6, %v1759_v35, %v2028_v58 }
 0xafd   : > { %1828 = vmatpush.msrb.mxu3 %v1811_v10  ;;  %v1806_v32 = vsel %vm1766_vm14, %v1758_v56, %v2027_v13 }
 0xaff   : > { %1829 = vmatpush.msrb.mxu3 %v1810_v1 }
 0xb01   : > { %1830 = vmatpush.msrb.mxu3 %v1809_v14 }
 0xb03   : > { %1831 = vmatpush.msrb.mxu3 %v1808_v22 }
 0xb05   : > { %1832 = vmatpush.msrb.mxu3 %v1807_v16 }
 0xb07   : > { %1833 = vmatpush.msrb.mxu3 %v1806_v32 }
 0xb08   : > { %2035 = vmatmul.msk.f32.vlgmr.msrb.gmra.mxu3 %vm648_vm3, %v1814_v18 }
 0xb8b   : > { %v1835_v20 = vpop.f32.mrf.mxu3 }
 0xb8c   : > { %1839 = vst.msk [vmem:[%s443_s26] sm:$0x3] %vm1838_vm9, %v1835_v20 }
 0xb8d PF: > { %s19_s30 = sadd.s32 1, %s2100_s30  }
 0xb8e   : > { %p16_p4 = scmp.ge.s32.totalorder %s19_s30, 7  }
 0xb90   :  { %18 = sbr.rel (!%p16_p4) target bundleno = 1 (0x1), region = 107 }

</bundles_post_ra>
